<compile_context>
chip_gen: v7x
topology: tpu7x:2x2x1
jax: 0.10.0
libtpu: 0.0.40
codegen_flags: <defaults>
</compile_context>

<pallas_src>
import jax
import jax.numpy as jnp
from jax.experimental import pallas as pl
from jax.experimental.pallas import tpu as pltpu


def _diffusion_epistemic_kernel(xt_ref, w1t_ref, b1_ref, w2_ref, b2_ref, o_ref):
    # xt_ref : (D, TN)   batch on the lane axis (lane-dense)
    # w1t_ref: (H, D)    fc1 weight, transposed vs. PyTorch storage (resident)
    # b1_ref : (H, 1)
    # w2_ref : (H, 1)    fc2 weight as a column (resident)
    # b2_ref : (1, 1)
    # o_ref  : (1, TN)

    # fc1 on the MXU: (H, D) @ (D, TN) -> (H, TN), fp32 contraction + f32 acc.
    h = jnp.dot(
        w1t_ref[...],
        xt_ref[...],
        preferred_element_type=jnp.float32,
        precision=jax.lax.Precision.HIGHEST,
    )
    h = h + b1_ref[...]                                 # bias broadcast along lanes

    # Softplus with beta=500, PyTorch semantics: linear when beta*x > threshold(=20).
    # Multiply by a precomputed 1/beta instead of dividing: the divide would be
    # an extra EUP reciprocal + VPU mul per vreg of the largest intermediate.
    beta = jnp.float32(500.0)
    inv_beta = jnp.float32(1.0 / 500.0)
    bh = beta * h
    sp = jnp.where(bh > 20.0, h,
                   jnp.log1p(jnp.exp(jnp.minimum(bh, 20.0))) * inv_beta)

    # fc2 (1-wide output): VPU broadcast-multiply + cross-sublane reduce over H.
    z = jnp.sum(sp * w2_ref[...], axis=0, keepdims=True) + b2_ref[...]   # (1, TN)

    # Exact sigmoid (only ~tn/128 vregs, so there is nothing to approximate away).
    o_ref[...] = 1.0 / (1.0 + jnp.exp(-z))


def _round_up(n, m):
    return pl.cdiv(n, m) * m


def _pick_batch_tile(n):
    """Pick the lane (batch) tile width.

    Small batches (<= 4096): one grid step covering the whole batch; the block
    equals the full array extent so no 128-alignment / masking is needed and
    per-step pipeline overhead is paid exactly once.
    Large batches: >=2048-wide tiles (multiple of 256), capped at 8192, and at
    least 2 grid steps so v7x megacore can split the work across TensorCores.
    """
    if n <= 4096:
        return n
    n_lanes = _round_up(n, 256)
    return max(2048, min(8192, _round_up(pl.cdiv(n_lanes, 2), 256)))


def diffusion_epistemic(x, w1, b1, w2, b2, *, tn=None):
    """Forward pass of Diffusion_epistemic.

    x : (N, D) float32   (nn.Linear input convention)
    w1: (D, H)           (transpose of PyTorch fc1.weight)
    b1: (H,) or (1, H)
    w2: (H, 1)           (transpose of PyTorch fc2.weight)
    b2: scalar-shaped
    returns (N, 1) float32
    """
    N, D = x.shape
    H = w1.shape[1]

    if tn is None:
        tn = _pick_batch_tile(N)
    grid = (pl.cdiv(N, tn),)

    # Lane-dense layout: features on sublanes, batch on the 128-lane axis.
    # No materialized zero-pad; the ragged edge block (if any) is masked by
    # Pallas on the output store.  (If callers keep x stored as (D, N)
    # upstream, even this transpose disappears.)
    xt = x.T
    w1t = jnp.asarray(w1, jnp.float32).T                  # (H, D)
    b1c = jnp.reshape(b1, (H, 1)).astype(jnp.float32)
    w2c = jnp.reshape(w2, (H, 1)).astype(jnp.float32)
    b2c = jnp.reshape(b2, (1, 1)).astype(jnp.float32)

    out = pl.pallas_call(
        _diffusion_epistemic_kernel,
        out_shape=jax.ShapeDtypeStruct((1, N), jnp.float32),
        grid=grid,
        in_specs=[
            pl.BlockSpec((D, tn), lambda i: (0, i)),      # x^T tile, pipelined
            pl.BlockSpec((H, D), lambda i: (0, 0)),       # weights stay resident
            pl.BlockSpec((H, 1), lambda i: (0, 0)),
            pl.BlockSpec((H, 1), lambda i: (0, 0)),
            pl.BlockSpec((1, 1), lambda i: (0, 0)),
        ],
        out_specs=pl.BlockSpec((1, tn), lambda i: (0, i)),
        compiler_params=pltpu.CompilerParams(
            dimension_semantics=("parallel",),            # megacore on v7x
        ),
    )(xt, w1t, b1c, w2c, b2c)

    return out.reshape(N, 1)


def _kaiming_uniform(key, fan_in, shape):
    # torch.nn.init.kaiming_uniform_ default: a=0 -> gain=sqrt(2),
    # bound = gain * sqrt(3 / fan_in)
    bound = jnp.sqrt(2.0) * jnp.sqrt(3.0 / fan_in)
    return jax.random.uniform(key, shape, jnp.float32, -bound, bound)


def _linear_bias_init(key, fan_in, shape):
    # torch default Linear bias init: U(-1/sqrt(fan_in), 1/sqrt(fan_in))
    bound = 1.0 / jnp.sqrt(fan_in)
    return jax.random.uniform(key, shape, jnp.float32, -bound, bound)


def _reference(x, w1, b1, w2, b2):
    h = jnp.dot(x, w1, precision=jax.lax.Precision.HIGHEST) + jnp.reshape(b1, (1, -1))
    beta = 500.0
    bh = beta * h
    sp = jnp.where(bh > 20.0, h, jnp.log1p(jnp.exp(jnp.minimum(bh, 20.0))) / beta)
    z = jnp.dot(sp, w2, precision=jax.lax.Precision.HIGHEST) + jnp.reshape(b2, (1, 1))
    return jax.nn.sigmoid(z)


if __name__ == "__main__":
    # Shapes consistent with the module: p=3, m=2
    p, m = 3, 2
    D = m * (p + 1) + 1          # = 9   (fc1 in_features)
    H = int(2 * D)               # = 18  (fc1 out_features)

    key = jax.random.PRNGKey(0)
    kx, kw1, kb1, kw2, kb2 = jax.random.split(key, 5)

    # Parameters (stored as (in, out) = transpose of PyTorch's (out, in))
    w1 = _kaiming_uniform(kw1, D, (D, H))
    b1 = _linear_bias_init(kb1, D, (1, H))
    w2 = _kaiming_uniform(kw2, H, (H, 1))
    b2 = _linear_bias_init(kb2, H, (1, 1))

    # Two batch sizes: single full-extent block, and multi-step grid with a
    # ragged (masked) edge block.
    for n in (1000, 5000):
        x = jax.random.normal(jax.random.fold_in(kx, n), (n, D), jnp.float32)

        out = jax.block_until_ready(diffusion_epistemic(x, w1, b1, w2, b2))
        ref = _reference(x, w1, b1, w2, b2)

        assert out.shape == (n, 1)
        assert jnp.allclose(out, ref, atol=1e-4, rtol=1e-4), (n, out, ref)

    print("KERNEL_OK")
</pallas_src>

<mosaic_0001>
module attributes {stable_mosaic.version = 11 : i64} {
  func.func @_diffusion_epistemic_kernel(%arg0: i32, %arg1: memref<9x1000xf32, #tpu.memory_space<vmem>>, %arg2: memref<18x9xf32, #tpu.memory_space<vmem>>, %arg3: memref<18x1xf32, #tpu.memory_space<vmem>>, %arg4: memref<18x1xf32, #tpu.memory_space<vmem>>, %arg5: memref<1x1xf32, #tpu.memory_space<vmem>>, %arg6: memref<1x1000xf32, #tpu.memory_space<vmem>>) attributes {dimension_semantics = [#tpu.dimension_semantics<parallel>], iteration_bounds = array<i64: 1>, scalar_prefetch = 0 : i64, scratch_operands = 0 : i64, tpu.core_type = #tpu.core_type<tc>, window_params = [{transform_indices = @transform_0, window_bounds = array<i64: 9, 1000>}, {pipeline_mode = #tpu.pipeline_mode<synchronous>, transform_indices = @transform_1, window_bounds = array<i64: 18, 9>}, {pipeline_mode = #tpu.pipeline_mode<synchronous>, transform_indices = @transform_2, window_bounds = array<i64: 18, 1>}, {pipeline_mode = #tpu.pipeline_mode<synchronous>, transform_indices = @transform_3, window_bounds = array<i64: 18, 1>}, {pipeline_mode = #tpu.pipeline_mode<synchronous>, transform_indices = @transform_4, window_bounds = array<i64: 1, 1>}, {transform_indices = @transform_5, window_bounds = array<i64: 1, 1000>}]} {
    %c0 = arith.constant 0 : index
    %c0_0 = arith.constant 0 : index
    %0 = vector.load %arg2[%c0, %c0_0] : memref<18x9xf32, #tpu.memory_space<vmem>>, vector<18x9xf32>
    %c0_1 = arith.constant 0 : index
    %c0_2 = arith.constant 0 : index
    %1 = vector.load %arg1[%c0_1, %c0_2] : memref<9x1000xf32, #tpu.memory_space<vmem>>, vector<9x1000xf32>
    %cst = arith.constant dense<0.000000e+00> : vector<18x1000xf32>
    %2 = tpu.matmul %0, %1, %cst {dimension_numbers = #tpu.dot_dimension_numbers<[1], [0], [0], [1], [0, 0, 1, 1], [], []>, precision = #tpu.contract_precision<fp32>} : vector<18x9xf32>, vector<9x1000xf32>, vector<18x1000xf32> -> vector<18x1000xf32>
    %c0_3 = arith.constant 0 : index
    %c0_4 = arith.constant 0 : index
    %3 = vector.load %arg3[%c0_3, %c0_4] : memref<18x1xf32, #tpu.memory_space<vmem>>, vector<18x1xf32>
    %4 = vector.broadcast %3 : vector<18x1xf32> to vector<18x1000xf32>
    %5 = arith.addf %2, %4 : vector<18x1000xf32>
    %cst_5 = arith.constant 5.000000e+02 : f32
    %6 = vector.broadcast %cst_5 : f32 to vector<18x1000xf32>
    %7 = arith.mulf %6, %5 : vector<18x1000xf32>
    %cst_6 = arith.constant 2.000000e+01 : f32
    %8 = vector.broadcast %cst_6 : f32 to vector<18x1000xf32>
    %9 = arith.cmpf ogt, %7, %8 : vector<18x1000xf32>
    %cst_7 = arith.constant 2.000000e+01 : f32
    %10 = vector.broadcast %cst_7 : f32 to vector<18x1000xf32>
    %11 = arith.minimumf %7, %10 : vector<18x1000xf32>
    %12 = math.exp %11 : vector<18x1000xf32>
    %13 = math.log1p %12 : vector<18x1000xf32>
    %cst_8 = arith.constant 2.000000e-03 : f32
    %14 = vector.broadcast %cst_8 : f32 to vector<18x1000xf32>
    %15 = arith.mulf %13, %14 : vector<18x1000xf32>
    %16 = arith.select %9, %5, %15 : vector<18x1000xi1>, vector<18x1000xf32>
    %c0_9 = arith.constant 0 : index
    %c0_10 = arith.constant 0 : index
    %17 = vector.load %arg4[%c0_9, %c0_10] : memref<18x1xf32, #tpu.memory_space<vmem>>, vector<18x1xf32>
    %18 = vector.broadcast %17 : vector<18x1xf32> to vector<18x1000xf32>
    %19 = arith.mulf %16, %18 : vector<18x1000xf32>
    %cst_11 = arith.constant dense<0.000000e+00> : vector<1000xf32>
    %20 = vector.multi_reduction <add>, %19, %cst_11 [0] : vector<18x1000xf32> to vector<1000xf32>
    %21 = vector.shape_cast %20 : vector<1000xf32> to vector<1x1000xf32>
    %c0_12 = arith.constant 0 : index
    %c0_13 = arith.constant 0 : index
    %22 = vector.load %arg5[%c0_12, %c0_13] : memref<1x1xf32, #tpu.memory_space<vmem>>, vector<1x1xf32>
    %23 = vector.broadcast %22 : vector<1x1xf32> to vector<1x1000xf32>
    %24 = arith.addf %21, %23 : vector<1x1000xf32>
    %cst_14 = arith.constant 0.000000e+00 : f32
    %25 = vector.broadcast %cst_14 : f32 to vector<1x1000xf32>
    %26 = arith.subf %25, %24 : vector<1x1000xf32>
    %27 = math.exp %26 : vector<1x1000xf32>
    %cst_15 = arith.constant 1.000000e+00 : f32
    %28 = vector.broadcast %cst_15 : f32 to vector<1x1000xf32>
    %29 = arith.addf %28, %27 : vector<1x1000xf32>
    %cst_16 = arith.constant 1.000000e+00 : f32
    %30 = vector.broadcast %cst_16 : f32 to vector<1x1000xf32>
    %31 = arith.divf %30, %29 : vector<1x1000xf32>
    %c0_17 = arith.constant 0 : index
    %c0_18 = arith.constant 0 : index
    %32 = vector.load %arg6[%c0_17, %c0_18] : memref<1x1000xf32, #tpu.memory_space<vmem>>, vector<1x1000xf32>
    tpu.vector_store %arg6[%c0_17, %c0_18], %31 {strides = array<i32>} : memref<1x1000xf32, #tpu.memory_space<vmem>>, vector<1x1000xf32>,
    return
  }
  func.func @transform_0(%arg0: i32) -> (i32, i32) {
    %c0_i32 = arith.constant 0 : i32
    %c0_i32_0 = arith.constant 0 : i32
    return %c0_i32, %arg0 : i32, i32
  }
  func.func @transform_1(%arg0: i32) -> (i32, i32) {
    %c0_i32 = arith.constant 0 : i32
    %c0_i32_0 = arith.constant 0 : i32
    %c0_i32_1 = arith.constant 0 : i32
    return %c0_i32, %c0_i32_0 : i32, i32
  }
  func.func @transform_2(%arg0: i32) -> (i32, i32) {
    %c0_i32 = arith.constant 0 : i32
    %c0_i32_0 = arith.constant 0 : i32
    %c0_i32_1 = arith.constant 0 : i32
    return %c0_i32, %c0_i32_0 : i32, i32
  }
  func.func @transform_3(%arg0: i32) -> (i32, i32) {
    %c0_i32 = arith.constant 0 : i32
    %c0_i32_0 = arith.constant 0 : i32
    %c0_i32_1 = arith.constant 0 : i32
    return %c0_i32, %c0_i32_0 : i32, i32
  }
  func.func @transform_4(%arg0: i32) -> (i32, i32) {
    %c0_i32 = arith.constant 0 : i32
    %c0_i32_0 = arith.constant 0 : i32
    %c0_i32_1 = arith.constant 0 : i32
    return %c0_i32, %c0_i32_0 : i32, i32
  }
  func.func @transform_5(%arg0: i32) -> (i32, i32) {
    %c0_i32 = arith.constant 0 : i32
    %c0_i32_0 = arith.constant 0 : i32
    return %c0_i32, %arg0 : i32, i32
  }
}

</mosaic_0001>

<bundles_post_ra>
// kernel: tpu_custom_call.1
= control target key start
LH: loop header
LB: loop body
LE: loop exit
PB: predicated region body
PF: predicated region fallthrough
CT: control target
= control target key end

     0   :  { %s4491_s0 = inlined_call_operand.hbm [shape: f32[9,1000], index: 0, kind: input, shape index: {}]   ;;  %s4492_s1 = inlined_call_operand.vmem [shape: f32[18,9], index: 1, kind: input, shape index: {}]   ;;  %s4493_s2 = inlined_call_operand.vmem [shape: f32[18,1], index: 2, kind: input, shape index: {}]   ;;  %s4494_s3 = inlined_call_operand.vmem [shape: f32[18,1], index: 3, kind: input, shape index: {}]   ;;  %s4495_s4 = inlined_call_operand.<no memory space> [shape: f32[1,1], index: 4, kind: input, shape index: {}]   ;;  %s4496_s5 = inlined_call_operand.hbm [shape: f32[1,1000], index: 5, kind: output, shape index: {}]  }
   0x1   :  { %v10_v0 = vstv %s4495_s4 }
   0x2   :  { %11 = vst [vmem:[#allocation2] sm:$0x1] %v10_v0 }
   0x3   :  { %12 = vsyncpa [#allocation4], 0 }
   0x4   :  { %13 = vsyncpa [#allocation5], 0  ;;  %s3537_s20 = smov [#allocation3]   ;;  %s3489_s24 = scalar_lea.hbm %s4491_s0, 2048 }
   0x5   :  { %s19_s21 = sshll.u32 %s3537_s20, 4  ;;  %p3490_p0 = scmp.ne.s32.totalorder %s4491_s0, %s3489_s24  ;;  %s20_s21 = int_to_ptr.vmem [resolvable:$true] %s19_s21 }
   0x6   :  { %p3493_p1 = scmp.lt.u32.totalorder %s3489_s24, %s4491_s0 }
   0x8   :  { %p3495_p2 = pnand %p3493_p1, %p3490_p0 }
   0xa   :  { %3498 = shalt.err (!%p3495_p2)
}
   0xb   :  { %s3499_s4 = scalar_lea.vmem %s20_s21, 2048  ;;  %p3504_p4 = scmp.lt.s32.totalorder %s20_s21, %s20_s21 }
   0xc   :  { %p3500_p3 = scmp.ne.s32.totalorder %s20_s21, %s3499_s4  ;;  %p3505_p5 = scmp.lt.s32.totalorder %s3499_s4, %s3499_s4 }
   0xe   :  { %p3506_p6 = por %p3505_p5, %p3504_p4 }
  0x10   :  { %p3507_p7 = pnand %p3506_p6, %p3500_p3 }
  0x12   :  { %3510 = shalt.err (!%p3507_p7)
}
  0x13   :  { %s3538_s29 = smov 1024   ;;  %s3539_s30 = smov 64  }
  0x14   :  { %25 = dma.hbm_to_vmem [thread:$0]  %s4491_s0, 2048, %s20_s21, [#allocation4], %s3538_s29, %s3538_s29, %s3539_s30  }
  0x15   :  { %3533 = dma.done.wait [#allocation4], 2048  }
  0x16   :  { %3534 = vsyncadd [#allocation4], 4294965248  ;;  %v3540_v1 = vmov 0.0   ;;  %vm84_vm0 = vcmask 1040384   ;;  %v41_v2 = vld [vmem:[#allocation3 + $0x8] sm:$0xff]  ;;  %v43_v4 = vld [vmem:[#allocation3 + $0x18] sm:$0xff] }
  0x17   :  { %177 = vmatprep.mubr.f32.mxu0 %v3540_v1  ;;  %766 = vmatprep.mubr.f32.mxu1 %v3540_v1  ;;  %v49_v3 = vld [vmem:[#allocation3 + $0x48] sm:$0x1]  ;;  %vm74_vm1 = vcmask 72704   ;;  %v109_v6 = vand.u32 4294901760, %v41_v2  ;;  %v51_v7 = vld [vmem:[#allocation3 + $0x58] sm:$0x1] }
  0x18   :  { %v89_v5 = vsel %vm84_vm0, %v49_v3, 0  ;;  %v698_v8 = vand.u32 4294901760, %v43_v4  ;;  %v40_v9 = vld [vmem:[#allocation3] sm:$0xff]  ;;  %v95_v11 = vsel %vm84_vm0, %v51_v7, 0  ;;  %v42_v14 = vld [vmem:[#allocation3 + $0x10] sm:$0xff] }
  0x19   :  { %v113_v10 = vand.u32 4294901760, %v89_v5  ;;  %v48_v12 = vld [vmem:[#allocation3 + $0x40] sm:$0x1]  ;;  %v111_v13 = vand.u32 4294901760, %v40_v9  ;;  %v3593_v15 = vsub.f32 %v41_v2, %v109_v6  ;;  %v702_v16 = vand.u32 4294901760, %v95_v11  ;;  %v38_v53 = vld [vmem:[%s4492_s1 + $0x8] sm:$0xff] }
  0x1a   :  { %v3595_v17 = vsub.f32 %v43_v4, %v698_v8  ;;  %v86_v18 = vsel %vm84_vm0, %v48_v12, 0  ;;  %v50_v19 = vld [vmem:[#allocation3 + $0x50] sm:$0x1]  ;;  %v37_v20 = vld [vmem:[%s4492_s1] sm:$0xff]  ;;  %v700_v28 = vand.u32 4294901760, %v42_v14  ;;  %v79_v3 = vsel %vm74_vm1, %v38_v53, 0 }
  0x1b   :  { %v3601_v21 = vpack.c.bf16 %v113_v10, %v109_v6  ;;  %v3603_v22 = vsub.f32 %v89_v5, %v113_v10  ;;  %v115_v23 = vand.u32 4294901760, %v86_v18  ;;  %v3605_v24 = vsub.f32 %v40_v9, %v111_v13  ;;  %v39_v58 = vld [vmem:[%s4492_s1 + $0x10] sm:$0x3] }
  0x1c   :  { %v3607_v25 = vpack.c.bf16 %v702_v16, %v698_v8  ;;  %v3609_v26 = vsub.f32 %v95_v11, %v702_v16  ;;  %v92_v27 = vsel %vm84_vm0, %v50_v19, 0  ;;  %v76_v32 = vsel %vm74_vm1, %v37_v20, 0 }
  0x1d   :  { %3113 = vmatprep.subr.bf16.mxu0 %v3601_v21  ;;  %v3613_v29 = vpack.c.bf16 %v115_v23, %v111_v13  ;;  %v3615_v30 = vsub.f32 %v86_v18, %v115_v23  ;;  %v704_v31 = vand.u32 4294901760, %v92_v27  ;;  %v3619_v33 = vsub.f32 %v42_v14, %v700_v28 }
  0x1e   :  { %3137 = vmatprep.subr.bf16.mxu1 %v3607_v25  ;;  %v3621_v34 = vand.u32 4294901760, %v76_v32  ;;  %v213_v35 = vand.u32 4294901760, %v3593_v15  ;;  %v225_v36 = vand.u32 4294901760, %v3603_v22  ;;  %v802_v39 = vand.u32 4294901760, %v3595_v17 }
  0x1f   :  { %3115 = vmatpush1.bf16.msra.mxu0 %v3613_v29  ;;  %v3626_v37 = vpack.c.bf16 %v704_v31, %v700_v28  ;;  %v3628_v38 = vsub.f32 %v92_v27, %v704_v31  ;;  %v814_v40 = vand.u32 4294901760, %v3609_v26  ;;  %v219_v44 = vand.u32 4294901760, %v3605_v24 }
  0x20   :  { %v3633_v41 = vsub.f32 %v76_v32, %v3621_v34  ;;  %v214_v42 = vsub.f32 %v3593_v15, %v213_v35  ;;  %v226_v43 = vsub.f32 %v3603_v22, %v225_v36  ;;  %v803_v45 = vsub.f32 %v3595_v17, %v802_v39 }
  0x21   :  { %3139 = vmatpush1.bf16.msra.mxu1 %v3626_v37  ;;  %v815_v46 = vsub.f32 %v3609_v26, %v814_v40  ;;  %v231_v47 = vand.u32 4294901760, %v3615_v30  ;;  %v808_v48 = vand.u32 4294901760, %v3619_v33  ;;  %v220_v52 = vsub.f32 %v3605_v24, %v219_v44 }
  0x22   :  { %v3652_v49 = vand.u32 4294901760, %v3633_v41  ;;  %v215_v50 = vand.u32 4294901760, %v214_v42  ;;  %v227_v51 = vand.u32 4294901760, %v226_v43  ;;  %v804_v54 = vand.u32 4294901760, %v803_v45  ;;  %v56_v42 = vld [vmem:[%s4493_s2] sm:$0xff] }
  0x23   :  { %v816_v55 = vand.u32 4294901760, %v815_v46  ;;  %v232_v56 = vsub.f32 %v3615_v30, %v231_v47  ;;  %v809_v57 = vsub.f32 %v3619_v33, %v808_v48  ;;  %v221_v61 = vand.u32 4294901760, %v220_v52  ;;  %v58_v43 = vld [vmem:[%s4493_s2 + $0x10] sm:$0x3]  ;;  %v57_v46 = vld [vmem:[%s4493_s2 + $0x8] sm:$0xff] }
  0x24   :  { %v181_v59 = vsub.f32 %v3633_v41, %v3652_v49  ;;  %v3116_v60 = vpack.c.bf16 %v227_v51, %v215_v50  ;;  %v820_v62 = vand.u32 4294901760, %v3628_v38  ;;  %v3678_v6 = vand.u32 4294901760, %v79_v3  ;;  %v2849_v50 = vld [vmem:[%s4494_s3] sm:$0xff] }
  0x25   :  { %v3140_v63 = vpack.c.bf16 %v816_v55, %v804_v54  ;;  %v233_v0 = vand.u32 4294901760, %v232_v56  ;;  %v810_v2 = vand.u32 4294901760, %v809_v57  ;;  %v82_v7 = vsel %vm74_vm1, %v39_v58, 0  ;;  %v54_v57 = vld [vmem:[#allocation3 + $0x70] sm:$0x1] }
  0x26   :  { %v3673_v4 = vand.u32 4294901760, %v181_v59  ;;  %3117 = vmatprep.subr.bf16.mxu0 %v3116_v60  ;;  %v821_v5 = vsub.f32 %v3628_v38, %v820_v62  ;;  %v3681_v9 = vand.u32 4294901760, %v82_v7  ;;  %v3120_v10 = vpack.c.bf16 %v3603_v22, %v3593_v15  ;;  %v2850_v15 = vld [vmem:[%s4494_s3 + $0x8] sm:$0xff]  ;;  %v2968_v22 = vld [vmem:[#allocation2] sm:$0x1] }
  0x27   :  { %3141 = vmatprep.subr.bf16.mxu1 %v3140_v63  ;;  %v3118_v8 = vpack.c.bf16 %v233_v0, %v221_v61  ;;  %v3688_v12 = vsub.f32 %v79_v3, %v3678_v6  ;;  %v3144_v14 = vpack.c.bf16 %v3609_v26, %v3595_v17  ;;  %v3122_v31 = vpack.c.bf16 %v3615_v30, %v3605_v24  ;;  %v2851_v17 = vld [vmem:[%s4494_s3 + $0x10] sm:$0x3]  ;;  %v47_v30 = vld [vmem:[#allocation3 + $0x38] sm:$0xff]  ;;  %v44_v60 = vld [vmem:[#allocation3 + $0x20] sm:$0xff]  ;;  %s3543_s3 = smov [#allocation6]  }
  0x28   :  { %183 = vmatmul.mubr.f32.vlgmr.msra.gmra.mrb[0].mxu0 %v3673_v4  ;;  %772 = vmatmul.mubr.f32.vlgmr.msra.gmra.mrb[0].mxu1 %v3673_v4  ;;  %v822_v11 = vand.u32 4294901760, %v821_v5  ;;  %v3692_v13 = vsub.f32 %v82_v7, %v3681_v9  ;;  %v3146_v32 = vpack.c.bf16 %v3628_v38, %v3619_v33  ;;  %v3541_v45 = vmov 0   ;;  %s3103_s23 = sshll.u32 %s3543_s3, 4  ;;  %s3104_s23 = int_to_ptr.vmem [resolvable:$true] %s3103_s23 }
  0x29   :  { %188 = vmatprep.mubr.f32.mxu0 %v3540_v1  ;;  %3119 = vmatpush1.bf16.msra.mxu0 %v3118_v8  ;;  %v3698_v18 = vand.u32 4294901760, %v3688_v12  ;;  %v3128_v51 = vpack.c.bf16 %v225_v36, %v213_v35  ;;  %v3152_v52 = vpack.c.bf16 %v814_v40, %v802_v39  ;;  %v3130_v26 = vpack.c.bf16 %v231_v47, %v219_v44  ;;  %v53_v36 = vld [vmem:[#allocation3 + $0x68] sm:$0x1]  ;;  %v55_v39 = vld [vmem:[#allocation3 + $0x78] sm:$0x1]  ;;  %s3511_s24 = scalar_lea.vmem %s3104_s23, 128  ;;  %p3516_p9 = scmp.lt.s32.totalorder %s3104_s23, %s3104_s23 }
  0x2a   :  { %777 = vmatprep.mubr.f32.mxu1 %v3540_v1  ;;  %v3142_v16 = vpack.c.bf16 %v822_v11, %v810_v2  ;;  %3121 = vmatprep.subr.bf16.mxu0 %v3120_v10  ;;  %v3701_v19 = vand.u32 4294901760, %v3692_v13  ;;  %v3154_v35 = vpack.c.bf16 %v820_v62, %v808_v48  ;;  %v45_v40 = vld [vmem:[#allocation3 + $0x28] sm:$0xff]  ;;  %v101_v24 = vsel %vm84_vm0, %v53_v36, 0  ;;  %v46_v2 = vld [vmem:[#allocation3 + $0x30] sm:$0xff]  ;;  %p3512_p8 = scmp.ne.s32.totalorder %s3104_s23, %s3511_s24  ;;  %p3517_p10 = scmp.lt.s32.totalorder %s3511_s24, %s3511_s24 }
  0x2b   :  { %v192_v20 = vsub.f32 %v3688_v12, %v3698_v18  ;;  %3359 = vset.pattern.permute.xlu0 %v3541_v45  ;;  %3360 = vset.pattern.permute.xlu1 %v3541_v45  ;;  %v107_v33 = vsel %vm84_vm0, %v55_v39, 0  ;;  %v1287_v38 = vand.u32 4294901760, %v45_v40  ;;  %v1291_v44 = vand.u32 4294901760, %v101_v24 }
  0x2c   :  { %3143 = vmatpush1.bf16.msra.mxu1 %v3142_v16  ;;  %v203_v23 = vsub.f32 %v3692_v13, %v3701_v19  ;;  %61 = vperm.xlu0 %3359, %v56_v42   ;;  %v1876_v47 = vand.u32 4294901760, %v47_v30  ;;  %v1880_v48 = vand.u32 4294901760, %v107_v33  ;;  %v104_v3 = vsel %vm84_vm0, %v54_v57, 0  ;;  %p3518_p11 = por %p3517_p10, %p3516_p9 }
  0x2d   :  { %3145 = vmatprep.subr.bf16.mxu1 %v3144_v14  ;;  %v3707_v27 = vand.u32 4294901760, %v192_v20  ;;  %71 = vperm.xlu1 %3360, %v58_v43   ;;  %v3797_v53 = vsub.f32 %v45_v40, %v1287_v38  ;;  %v3799_v54 = vsub.f32 %v101_v24, %v1291_v44  ;;  %v3809_v56 = vpack.c.bf16 %v1291_v44, %v1287_v38 }
  0x2e   :  { %v3711_v28 = vand.u32 4294901760, %v203_v23  ;;  %v3801_v55 = vsub.f32 %v47_v30, %v1876_v47  ;;  %v3812_v59 = vpack.c.bf16 %v1880_v48, %v1876_v47  ;;  %v1289_v5 = vand.u32 4294901760, %v44_v60  ;;  %p3519_p12 = pnand %p3518_p11, %p3512_p8 }
  0x2f   :  { %194 = vmatmul.mubr.f32.gmra.mrb[2].mxu0 %v3707_v27  ;;  %783 = vmatmul.mubr.f32.gmra.mrb[2].mxu1 %v3707_v27  ;;  %v1391_v58 = vand.u32 4294901760, %v3797_v53  ;;  %v1403_v61 = vand.u32 4294901760, %v3799_v54  ;;  %v1878_v11 = vand.u32 4294901760, %v46_v2  ;;  %v1882_v14 = vand.u32 4294901760, %v104_v3 }
  0x30   :  { %199 = vmatprep.mubr.f32.mxu0 %v3540_v1  ;;  %788 = vmatprep.mubr.f32.mxu1 %v3540_v1  ;;  %v1980_v62 = vand.u32 4294901760, %v3801_v55  ;;  %v3843_v16 = vsub.f32 %v44_v60, %v1289_v5 }
  0x31   :  { %66 = vperm.xlu0 %3359, %v57_v46   ;;  %2854 = vperm.xlu1 %3360, %v2849_v50   ;;  %v1392_v7 = vsub.f32 %v3797_v53, %v1391_v58  ;;  %v3847_v23 = vsub.f32 %v46_v2, %v1878_v11 }
  0x32   :  { %v1981_v10 = vsub.f32 %v3801_v55, %v1980_v62  ;;  %v1397_v46 = vand.u32 4294901760, %v3843_v16 }
  0x33   :  { %205 = vmatmul.mubr.f32.gmra.mrb[4].mxu0 %v3711_v28  ;;  %794 = vmatmul.mubr.f32.gmra.mrb[4].mxu1 %v3711_v28 }
  0x34   :  { %295 = vmatprep.mubr.f32.mxu0 %v3540_v1  ;;  %884 = vmatprep.mubr.f32.mxu1 %v3540_v1  ;;  %v1982_v43 = vand.u32 4294901760, %v1981_v10 }
  0x35   :  { %2859 = vperm.xlu0 %3359, %v2850_v15   ;;  %2864 = vperm.xlu1 %3360, %v2851_v17   ;;  %v1986_v15 = vand.u32 4294901760, %v3847_v23 }
  0x37   :  { %297 = vmatmul.mubr.f32.vlgmr.msra.gmra.mrb[0].mxu0 %v3621_v34  ;;  %886 = vmatmul.mubr.f32.vlgmr.msra.gmra.mrb[0].mxu1 %v3621_v34  ;;  %v1987_v39 = vsub.f32 %v3847_v23, %v1986_v15 }
  0x38   :  { %302 = vmatprep.mubr.f32.mxu0 %v3540_v1  ;;  %3123 = vmatpush1.bf16.msra.mxu0 %v3122_v31  ;;  %v3849_v31 = vsub.f32 %v104_v3, %v1882_v14 }
  0x39   :  { %891 = vmatprep.mubr.f32.mxu1 %v3540_v1  ;;  %3147 = vmatpush1.bf16.msra.mxu1 %v3146_v32  ;;  %v1393_v32 = vand.u32 4294901760, %v1392_v7 }
  0x3a   :  { %3125 = vmatprep.subr.bf16.mxu0 %v3601_v21  ;;  %3149 = vmatprep.subr.bf16.mxu1 %v3607_v25  ;;  %v1998_v17 = vand.u32 4294901760, %v3849_v31  ;;  %v3194_v57 = vpack.c.bf16 %v3849_v31, %v3847_v23 }
  0x3b   :  { %304 = vmatmul.mubr.f32.gmra.mrb[2].mxu0 %v3678_v6  ;;  %893 = vmatmul.mubr.f32.gmra.mrb[2].mxu1 %v3678_v6 }
  0x3c   :  { %309 = vmatprep.mubr.f32.mxu0 %v3540_v1  ;;  %898 = vmatprep.mubr.f32.mxu1 %v3540_v1  ;;  %v1999_v40 = vsub.f32 %v3849_v31, %v1998_v17 }
  0x3d   :  { %2971 = vperm.xlu0 %3359, %v2968_v22  }
  0x3e   :  { %v2000_v38 = vand.u32 4294901760, %v1999_v40 }
  0x3f   :  { %311 = vmatmul.mubr.f32.gmra.mrb[4].mxu0 %v3681_v9  ;;  %900 = vmatmul.mubr.f32.gmra.mrb[4].mxu1 %v3681_v9 }
  0x40   :  { %389 = vmatprep.mubr.f32.mxu0 %v3540_v1  ;;  %978 = vmatprep.mubr.f32.mxu1 %v3540_v1 }
  0x43   :  { %392 = vmatmul.mubr.f32.vlgmr.msra.gmra.mrb[0].mxu0 %v3633_v41  ;;  %981 = vmatmul.mubr.f32.vlgmr.msra.gmra.mrb[0].mxu1 %v3633_v41 }
  0x44   :  { %397 = vmatprep.mubr.f32.mxu0 %v3540_v1  ;;  %3127 = vmatpush1.bf16.msra.mxu0 %v3613_v29 }
  0x45   :  { %986 = vmatprep.mubr.f32.mxu1 %v3540_v1  ;;  %3151 = vmatpush1.bf16.msra.mxu1 %v3626_v37 }
  0x46   :  { %3129 = vmatprep.subr.bf16.mxu0 %v3128_v51  ;;  %3153 = vmatprep.subr.bf16.mxu1 %v3152_v52  ;;  %v3859_v52 = vpack.c.bf16 %v1882_v14, %v1878_v11 }
  0x47   :  { %400 = vmatmul.mubr.f32.gmra.mrb[2].mxu0 %v3688_v12  ;;  %989 = vmatmul.mubr.f32.gmra.mrb[2].mxu1 %v3688_v12 }
  0x48   :  { %405 = vmatprep.mubr.f32.mxu0 %v3540_v1  ;;  %994 = vmatprep.mubr.f32.mxu1 %v3540_v1 }
  0x4b   :  { %408 = vmatmul.mubr.f32.gmra.mrb[4].mxu0 %v3692_v13  ;;  %997 = vmatmul.mubr.f32.gmra.mrb[4].mxu1 %v3692_v13 }
  0x4c   :  { %482 = vmatprep.mubr.f32.mxu0 %v3540_v1  ;;  %1071 = vmatprep.mubr.f32.mxu1 %v3540_v1 }
  0x4f   :  { %486 = vmatmul.mubr.f32.vlgmr.msra.gmra.mrb[0].mxu0 %v3652_v49  ;;  %1075 = vmatmul.mubr.f32.vlgmr.msra.gmra.mrb[0].mxu1 %v3652_v49 }
  0x50   :  { %491 = vmatprep.mubr.f32.mxu0 %v3540_v1  ;;  %3131 = vmatpush1.bf16.msra.mxu0 %v3130_v26 }
  0x51   :  { %1080 = vmatprep.mubr.f32.mxu1 %v3540_v1  ;;  %3155 = vmatpush1.bf16.msra.mxu1 %v3154_v35  ;;  %v1398_v35 = vsub.f32 %v3843_v16, %v1397_v46 }
  0x52   :  { %3133 = vmatprep.subr.bf16.mxu0 %v3601_v21  ;;  %3157 = vmatprep.subr.bf16.mxu1 %v3607_v25  ;;  %v3803_v21 = vsub.f32 %v107_v33, %v1880_v48  ;;  %v52_v25 = vld [vmem:[#allocation3 + $0x60] sm:$0x1]  ;;  %v1988_v33 = vand.u32 4294901760, %v1987_v39  ;;  %v3168_v48 = vpack.c.bf16 %v3799_v54, %v3797_v53 }
  0x53   :  { %495 = vmatmul.mubr.f32.gmra.mrb[2].mxu0 %v3698_v18  ;;  %1084 = vmatmul.mubr.f32.gmra.mrb[2].mxu1 %v3698_v18  ;;  %v98_v0 = vsel %vm84_vm0, %v52_v25, 0  ;;  %v1399_v24 = vand.u32 4294901760, %v1398_v35 }
  0x54   :  { %500 = vmatprep.mubr.f32.mxu0 %v3540_v1  ;;  %1089 = vmatprep.mubr.f32.mxu1 %v3540_v1  ;;  %v1992_v63 = vand.u32 4294901760, %v3803_v21  ;;  %v1293_v8 = vand.u32 4294901760, %v98_v0  ;;  %v3190_v47 = vpack.c.bf16 %v2000_v38, %v1988_v33  ;;  %v3192_v25 = vpack.c.bf16 %v3803_v21, %v3801_v55 }
  0x56   :  { %v3845_v20 = vsub.f32 %v98_v0, %v1293_v8  ;;  %v3857_v51 = vpack.c.bf16 %v1293_v8, %v1289_v5 }
  0x57   :  { %504 = vmatmul.mubr.f32.gmra.mrb[4].mxu0 %v3701_v19  ;;  %1093 = vmatmul.mubr.f32.gmra.mrb[4].mxu1 %v3701_v19 }
  0x58   :  { %586 = vmatprep.mubr.f32.mxu0 %v3540_v1  ;;  %1175 = vmatprep.mubr.f32.mxu1 %v3540_v1  ;;  %v1409_v50 = vand.u32 4294901760, %v3845_v20 }
  0x5a   :  { %v1410_v36 = vsub.f32 %v3845_v20, %v1409_v50 }
  0x5b   :  { %588 = vmatmul.mubr.f32.vlgmr.msra.gmra.mrb[0].mxu0 %v3621_v34  ;;  %1177 = vmatmul.mubr.f32.vlgmr.msra.gmra.mrb[0].mxu1 %v3621_v34 }
  0x5c   :  { %593 = vmatprep.mubr.f32.mxu0 %v3540_v1  ;;  %3135 = vmatpush1.bf16.msra.mxu0 %v3613_v29  ;;  %v1404_v29 = vsub.f32 %v3799_v54, %v1403_v61  ;;  %v1411_v30 = vand.u32 4294901760, %v1410_v36 }
  0x5d   :  { %1182 = vmatprep.mubr.f32.mxu1 %v3540_v1  ;;  %3159 = vmatpush1.bf16.msra.mxu1 %v3626_v37  ;;  %v1993_v37 = vsub.f32 %v3803_v21, %v1992_v63 }
  0x5e   :  { %3161 = vmatprep.subr.bf16.mxu0 %v3809_v56  ;;  %3185 = vmatprep.subr.bf16.mxu1 %v3812_v59  ;;  %v1405_v42 = vand.u32 4294901760, %v1404_v29  ;;  %v3166_v44 = vpack.c.bf16 %v1411_v30, %v1399_v24 }
  0x5f   :  { %595 = vmatmul.mubr.f32.gmra.mrb[2].mxu0 %v3678_v6  ;;  %1184 = vmatmul.mubr.f32.gmra.mrb[2].mxu1 %v3678_v6  ;;  %v1994_v45 = vand.u32 4294901760, %v1993_v37 }
  0x60   :  { %600 = vmatprep.mubr.f32.mxu0 %v3540_v1  ;;  %1189 = vmatprep.mubr.f32.mxu1 %v3540_v1  ;;  %v3164_v22 = vpack.c.bf16 %v1405_v42, %v1393_v32 }
  0x61   :  { %v3188_v26 = vpack.c.bf16 %v1994_v45, %v1982_v43 }
  0x63   :  { %602 = vmatmul.mubr.f32.gmra.mrb[4].mxu0 %v3681_v9  ;;  %1191 = vmatmul.mubr.f32.gmra.mrb[4].mxu1 %v3681_v9 }
  0x64   :  { %676 = vmatprep.mubr.f32.mxu0 %v3540_v1  ;;  %1265 = vmatprep.mubr.f32.mxu1 %v3540_v1 }
  0x67   :  { %678 = vmatmul.mubr.f32.vlgmr.msra.gmra.mrb[0].mxu0 %v3621_v34  ;;  %1267 = vmatmul.mubr.f32.vlgmr.msra.gmra.mrb[0].mxu1 %v3621_v34 }
  0x68   :  { %683 = vmatprep.mubr.f32.mxu0 %v3540_v1  ;;  %1272 = vmatprep.mubr.f32.mxu1 %v3540_v1 }
  0x69   :  { %3163 = vmatpush1.bf16.msra.mxu0 %v3857_v51  ;;  %3187 = vmatpush1.bf16.msra.mxu1 %v3859_v52 }
  0x6a   :  { %3165 = vmatprep.subr.bf16.mxu0 %v3164_v22  ;;  %3189 = vmatprep.subr.bf16.mxu1 %v3188_v26 }
  0x6b   :  { %685 = vmatmul.mubr.f32.gmra.mrb[2].mxu0 %v3678_v6  ;;  %1274 = vmatmul.mubr.f32.gmra.mrb[2].mxu1 %v3678_v6 }
  0x6c   :  { %690 = vmatprep.mubr.f32.mxu0 %v3540_v1  ;;  %1279 = vmatprep.mubr.f32.mxu1 %v3540_v1 }
  0x6f   :  { %692 = vmatmul.mubr.f32.gmra.mrb[4].mxu0 %v3681_v9  ;;  %1281 = vmatmul.mubr.f32.gmra.mrb[4].mxu1 %v3681_v9 }
  0x70   :  { %1355 = vmatprep.mubr.f32.mxu0 %v3540_v1  ;;  %1944 = vmatprep.mubr.f32.mxu1 %v3540_v1 }
  0x73   :  { %1361 = vmatmul.mubr.f32.vlgmr.msra.gmra.mrb[6].mxu0 %v3673_v4  ;;  %1950 = vmatmul.mubr.f32.vlgmr.msra.gmra.mrb[6].mxu1 %v3673_v4  ;;  %v3170_v4 = vpack.c.bf16 %v3845_v20, %v3843_v16 }
  0x74   :  { %1366 = vmatprep.mubr.f32.mxu0 %v3540_v1  ;;  %3167 = vmatpush1.bf16.msra.mxu0 %v3166_v44 }
  0x75   :  { %1955 = vmatprep.mubr.f32.mxu1 %v3540_v1  ;;  %3191 = vmatpush1.bf16.msra.mxu1 %v3190_v47 }
  0x76   :  { %3169 = vmatprep.subr.bf16.mxu0 %v3168_v48  ;;  %3193 = vmatprep.subr.bf16.mxu1 %v3192_v25 }
  0x77   :  { %1372 = vmatmul.mubr.f32.gmra.mrb[8].mxu0 %v3707_v27  ;;  %1961 = vmatmul.mubr.f32.gmra.mrb[8].mxu1 %v3707_v27  ;;  %v3176_v27 = vpack.c.bf16 %v1403_v61, %v1391_v58 }
  0x78   :  { %1377 = vmatprep.mubr.f32.mxu0 %v3540_v1  ;;  %1966 = vmatprep.mubr.f32.mxu1 %v3540_v1 }
  0x7b   :  { %1383 = vmatmul.mubr.f32.gmra.mrb[10].mxu0 %v3711_v28  ;;  %1972 = vmatmul.mubr.f32.gmra.mrb[10].mxu1 %v3711_v28  ;;  %v3200_v28 = vpack.c.bf16 %v1992_v63, %v1980_v62 }
  0x7c   :  { %1473 = vmatprep.mubr.f32.mxu0 %v3540_v1  ;;  %2062 = vmatprep.mubr.f32.mxu1 %v3540_v1 }
  0x7f   :  { %1475 = vmatmul.mubr.f32.vlgmr.msra.gmra.mrb[6].mxu0 %v3621_v34  ;;  %2064 = vmatmul.mubr.f32.vlgmr.msra.gmra.mrb[6].mxu1 %v3621_v34 }
  0x80   :  { %1480 = vmatprep.mubr.f32.mxu0 %v3540_v1  ;;  %3171 = vmatpush1.bf16.msra.mxu0 %v3170_v4 }
  0x81   :  { %2069 = vmatprep.mubr.f32.mxu1 %v3540_v1  ;;  %3195 = vmatpush1.bf16.msra.mxu1 %v3194_v57 }
  0x82   :  { %3173 = vmatprep.subr.bf16.mxu0 %v3809_v56  ;;  %3197 = vmatprep.subr.bf16.mxu1 %v3812_v59 }
  0x83   :  { %1482 = vmatmul.mubr.f32.gmra.mrb[8].mxu0 %v3678_v6  ;;  %2071 = vmatmul.mubr.f32.gmra.mrb[8].mxu1 %v3678_v6 }
  0x84   :  { %1487 = vmatprep.mubr.f32.mxu0 %v3540_v1  ;;  %2076 = vmatprep.mubr.f32.mxu1 %v3540_v1 }
  0x87   :  { %1489 = vmatmul.mubr.f32.gmra.mrb[10].mxu0 %v3681_v9  ;;  %2078 = vmatmul.mubr.f32.gmra.mrb[10].mxu1 %v3681_v9 }
  0x88   :  { %1567 = vmatprep.mubr.f32.mxu0 %v3540_v1  ;;  %2156 = vmatprep.mubr.f32.mxu1 %v3540_v1 }
  0x8b   :  { %1570 = vmatmul.mubr.f32.vlgmr.msra.gmra.mrb[6].mxu0 %v3633_v41  ;;  %2159 = vmatmul.mubr.f32.vlgmr.msra.gmra.mrb[6].mxu1 %v3633_v41  ;;  %v3178_v41 = vpack.c.bf16 %v1409_v50, %v1397_v46 }
  0x8c   :  { %1575 = vmatprep.mubr.f32.mxu0 %v3540_v1  ;;  %3175 = vmatpush1.bf16.msra.mxu0 %v3857_v51 }
  0x8d   :  { %2164 = vmatprep.mubr.f32.mxu1 %v3540_v1  ;;  %3199 = vmatpush1.bf16.msra.mxu1 %v3859_v52 }
  0x8e   :  { %3177 = vmatprep.subr.bf16.mxu0 %v3176_v27  ;;  %3201 = vmatprep.subr.bf16.mxu1 %v3200_v28 }
  0x8f   :  { %1578 = vmatmul.mubr.f32.gmra.mrb[8].mxu0 %v3688_v12  ;;  %2167 = vmatmul.mubr.f32.gmra.mrb[8].mxu1 %v3688_v12  ;;  %v3202_v12 = vpack.c.bf16 %v1998_v17, %v1986_v15 }
  0x90   :  { %1583 = vmatprep.mubr.f32.mxu0 %v3540_v1  ;;  %2172 = vmatprep.mubr.f32.mxu1 %v3540_v1 }
  0x93   :  { %1586 = vmatmul.mubr.f32.gmra.mrb[10].mxu0 %v3692_v13  ;;  %2175 = vmatmul.mubr.f32.gmra.mrb[10].mxu1 %v3692_v13 }
  0x94   :  { %1660 = vmatprep.mubr.f32.mxu0 %v3540_v1  ;;  %2249 = vmatprep.mubr.f32.mxu1 %v3540_v1 }
  0x97   :  { %1664 = vmatmul.mubr.f32.vlgmr.msra.gmra.mrb[6].mxu0 %v3652_v49  ;;  %2253 = vmatmul.mubr.f32.vlgmr.msra.gmra.mrb[6].mxu1 %v3652_v49 }
  0x98   :  { %1669 = vmatprep.mubr.f32.mxu0 %v3540_v1  ;;  %3179 = vmatpush1.bf16.msra.mxu0 %v3178_v41 }
  0x99   :  { %2258 = vmatprep.mubr.f32.mxu1 %v3540_v1  ;;  %3203 = vmatpush1.bf16.msra.mxu1 %v3202_v12 }
  0x9a   :  { %3181 = vmatprep.subr.bf16.mxu0 %v3809_v56  ;;  %3205 = vmatprep.subr.bf16.mxu1 %v3812_v59 }
  0x9b   :  { %1673 = vmatmul.mubr.f32.gmra.mrb[8].mxu0 %v3698_v18  ;;  %2262 = vmatmul.mubr.f32.gmra.mrb[8].mxu1 %v3698_v18 }
  0x9c   :  { %1678 = vmatprep.mubr.f32.mxu0 %v3540_v1  ;;  %2267 = vmatprep.mubr.f32.mxu1 %v3540_v1 }
  0x9f   :  { %1682 = vmatmul.mubr.f32.gmra.mrb[10].mxu0 %v3701_v19  ;;  %2271 = vmatmul.mubr.f32.gmra.mrb[10].mxu1 %v3701_v19 }
  0xa0   :  { %1764 = vmatprep.mubr.f32.mxu0 %v3540_v1  ;;  %2353 = vmatprep.mubr.f32.mxu1 %v3540_v1 }
  0xa3   :  { %1766 = vmatmul.mubr.f32.vlgmr.msra.gmra.mrb[6].mxu0 %v3621_v34  ;;  %2355 = vmatmul.mubr.f32.vlgmr.msra.gmra.mrb[6].mxu1 %v3621_v34 }
  0xa4   :  { %1771 = vmatprep.mubr.f32.mxu0 %v3540_v1  ;;  %3183 = vmatpush1.bf16.msra.mxu0 %v3857_v51 }
  0xa5   :  { %2360 = vmatprep.mubr.f32.mxu1 %v3540_v1  ;;  %3207 = vmatpush1.bf16.msra.mxu1 %v3859_v52 }
  0xa7   :  { %1773 = vmatmul.mubr.f32.gmra.mrb[8].mxu0 %v3678_v6  ;;  %2362 = vmatmul.mubr.f32.gmra.mrb[8].mxu1 %v3678_v6 }
  0xa8   :  { %1778 = vmatprep.mubr.f32.mxu0 %v3540_v1  ;;  %2367 = vmatprep.mubr.f32.mxu1 %v3540_v1 }
  0xab   :  { %1780 = vmatmul.mubr.f32.gmra.mrb[10].mxu0 %v3681_v9  ;;  %2369 = vmatmul.mubr.f32.gmra.mrb[10].mxu1 %v3681_v9  ;;  %v3991_v49 = vpop.permute.xlu0 %61 }
  0xac   :  { %1854 = vmatprep.mubr.f32.mxu0 %v3540_v1  ;;  %2443 = vmatprep.mubr.f32.mxu1 %v3540_v1  ;;  %v4023_v5 = vpop.permute.xlu1 %71 }
  0xaf   :  { %1856 = vmatmul.mubr.f32.vlgmr.msra.gmra.mrb[6].mxu0 %v3621_v34  ;;  %2445 = vmatmul.mubr.f32.vlgmr.msra.gmra.mrb[6].mxu1 %v3621_v34 }
  0xb0   :  { %1861 = vmatprep.mubr.f32.mxu0 %v3540_v1  ;;  %2450 = vmatprep.mubr.f32.mxu1 %v3540_v1  ;;  %v4011_v21 = vpop.permute.xlu0 %66 }
  0xb3   :  { %1863 = vmatmul.mubr.f32.gmra.mrb[8].mxu0 %v3678_v6  ;;  %2452 = vmatmul.mubr.f32.gmra.mrb[8].mxu1 %v3678_v6 }
  0xb4   :  { %1868 = vmatprep.mubr.f32.mxu0 %v3540_v1  ;;  %2457 = vmatprep.mubr.f32.mxu1 %v3540_v1 }
  0xb7   :  { %1870 = vmatmul.mubr.f32.gmra.mrb[10].mxu0 %v3681_v9  ;;  %2459 = vmatmul.mubr.f32.gmra.mrb[10].mxu1 %v3681_v9 }
 0x13a   :  { %v679_v13 = vpop.f32.mrb[0].mxu0  ;;  %v1268_v34 = vpop.f32.mrb[0].mxu1 }
 0x13b   :  { %v3994_v18 = vadd.f32 %v679_v13, %v3991_v49  ;;  %v3997_v19 = vadd.f32 %v1268_v34, %v3991_v49  ;;  %v681_v53 = vpop.f32.mrb[1].mxu0  ;;  %v1270_v6 = vpop.f32.mrb[1].mxu1 }
 0x13c   :  { %v4000_v54 = vadd.f32 %v681_v53, %v3991_v49  ;;  %v4003_v1 = vadd.f32 %v1270_v6, %v3991_v49 }
 0x13d   :  { %v4006_v9 = vmul.f32 500.0, %v3994_v18  ;;  %v4009_v55 = vmul.f32 500.0, %v3997_v19 }
 0x13e   :  { %v4014_v56 = vmul.f32 500.0, %v4000_v54  ;;  %v4017_v58 = vmul.f32 500.0, %v4003_v1  ;;  %v686_v59 = vpop.f32.mrb[2].mxu0  ;;  %v1275_v60 = vpop.f32.mrb[2].mxu1 }
 0x13f   :  { %v2513_v61 = vmin.f32 %v4006_v9, 20.0  ;;  %v2515_v62 = vmin.f32 %v4009_v55, 20.0  ;;  %v688_v63 = vpop.f32.mrb[3].mxu0  ;;  %v1277_v0 = vpop.f32.mrb[3].mxu1  ;;  %v4026_v29 = vadd.f32 %v686_v59, %v4011_v21  ;;  %v4029_v10 = vadd.f32 %v1275_v60, %v4011_v21 }
 0x140   :  { %v2514_v2 = vmin.f32 %v4014_v56, 20.0  ;;  %v2516_v3 = vmin.f32 %v4017_v58, 20.0  ;;  %v4032_v14 = vadd.f32 %v688_v63, %v4011_v21  ;;  %v4035_v16 = vadd.f32 %v1277_v0, %v4011_v21 }
 0x141   :  { %v2537_v7 = vmul.f32 1.442695, %v2513_v61  ;;  %v2541_v8 = vmul.f32 1.442695, %v2515_v62  ;;  %v4038_v31 = vmul.f32 500.0, %v4026_v29  ;;  %v4041_v32 = vmul.f32 500.0, %v4029_v10 }
 0x142   :  { %v2539_v37 = vmul.f32 1.442695, %v2514_v2  ;;  %v2543_v11 = vmul.f32 1.442695, %v2516_v3  ;;  %v693_v20 = vpop.f32.mrb[4].mxu0  ;;  %v1282_v23 = vpop.f32.mrb[4].mxu1 }
 0x143   :  { %3361 = vpow2.f32 %v2537_v7  ;;  %v4044_v42 = vadd.f32 %v693_v20, %v4023_v5  ;;  %v695_v43 = vpop.f32.mrb[5].mxu0  ;;  %v1284_v45 = vpop.f32.mrb[5].mxu1  ;;  %v4047_v46 = vmul.f32 500.0, %v4032_v14  ;;  %v4050_v50 = vmul.f32 500.0, %v4035_v16 }
 0x144   :  { %3363 = vpow2.f32 %v2541_v8  ;;  %v4053_v51 = vadd.f32 %v1282_v23, %v4023_v5  ;;  %v2521_v52 = vmin.f32 %v4038_v31, 20.0  ;;  %v2523_v15 = vmin.f32 %v4041_v32, 20.0 }
 0x145   :  { %3365 = vpow2.f32 %v2539_v37  ;;  %v2522_v17 = vmin.f32 %v4047_v46, 20.0  ;;  %v2524_v26 = vmin.f32 %v4050_v50, 20.0  ;;  %v4060_v35 = vmul.f32 500.0, %v4044_v42 }
 0x146   :  { %3367 = vpow2.f32 %v2543_v11  ;;  %v2553_v22 = vmul.f32 1.442695, %v2521_v52  ;;  %v2557_v36 = vmul.f32 1.442695, %v2523_v15  ;;  %v4063_v40 = vmul.f32 500.0, %v4053_v51 }
 0x147   :  { %v2555_v39 = vmul.f32 1.442695, %v2522_v17  ;;  %v4066_v24 = vadd.f32 %v695_v43, %v4023_v5  ;;  %v2559_v30 = vmul.f32 1.442695, %v2524_v26  ;;  %v2529_v33 = vmin.f32 %v4060_v35, 20.0 }
 0x148   :  { %3369 = vpow2.f32 %v2553_v22  ;;  %v2531_v38 = vmin.f32 %v4063_v40, 20.0  ;;  %v4075_v28 = vadd.f32 %v1284_v45, %v4023_v5  ;;  %vm2489_vm5 = vcmp.gt.f32.partialorder %v4006_v9, 20.0 }
 0x149   :  { %3371 = vpow2.f32 %v2557_v36  ;;  %v4071_v44 = vmul.f32 500.0, %v4066_v24  ;;  %v2569_v47 = vmul.f32 1.442695, %v2529_v33  ;;  %vm2491_vm8 = vcmp.gt.f32.partialorder %v4009_v55, 20.0 }
 0x14a   :  { %3373 = vpow2.f32 %v2555_v39  ;;  %v2573_v48 = vmul.f32 1.442695, %v2531_v38  ;;  %v4080_v0 = vmul.f32 500.0, %v4075_v28  ;;  %vm2490_vm9 = vcmp.gt.f32.partialorder %v4014_v56, 20.0 }
 0x14b   :  { %3375 = vpow2.f32 %v2559_v30  ;;  %v2530_v27 = vmin.f32 %v4071_v44, 20.0  ;;  %vm2492_vm11 = vcmp.gt.f32.partialorder %v4017_v58, 20.0  ;;  %vm2497_vm12 = vcmp.gt.f32.partialorder %v4038_v31, 20.0 }
 0x14c   :  { %3377 = vpow2.f32 %v2569_v47  ;;  %vm2499_vm13 = vcmp.gt.f32.partialorder %v4041_v32, 20.0  ;;  %vm2498_vm15 = vcmp.gt.f32.partialorder %v4047_v46, 20.0  ;;  %vm2500_vm1 = vcmp.gt.f32.partialorder %v4050_v50, 20.0 }
 0x14d   :  { %v3362_v25 = vpop.eup %3361  ;;  %3379 = vpow2.f32 %v2573_v48  ;;  %v4077_v63 = vmul.f32 1.442695, %v2530_v27 }
 0x14e   :  { %v3364_v4 = vpop.eup %3363  ;;  %v2585_v57 = vadd.f32 1.0, %v3362_v25  ;;  %v2588_v12 = vmul.f32 -0.5, %v3362_v25  ;;  %v2591_v6 = vand.u32 2147483647, %v3362_v25 }
 0x14f   :  { %v3366_v41 = vpop.eup %3365  ;;  %v2603_v13 = vadd.f32 1.0, %v3364_v4  ;;  %v2606_v34 = vmul.f32 -0.5, %v3364_v4  ;;  %v2609_v60 = vand.u32 2147483647, %v3364_v4 }
 0x150   :  { %v3368_v53 = vpop.eup %3367  ;;  %3381 = vlog2.f32 %v2585_v57  ;;  %v2594_v59 = vadd.f32 1.0, %v3366_v41  ;;  %v2597_v61 = vmul.f32 -0.5, %v3366_v41  ;;  %v2589_v3 = vadd.f32 1.0, %v2588_v12 }
 0x151   :  { %3383 = vlog2.f32 %v2603_v13  ;;  %v2612_v62 = vadd.f32 1.0, %v3368_v53  ;;  %v2607_v7 = vadd.f32 1.0, %v2606_v34  ;;  %v2600_v8 = vand.u32 2147483647, %v3366_v41 }
 0x152   :  { %3385 = vlog2.f32 %v2594_v59  ;;  %v3370_v2 = vpop.eup %3369  ;;  %v2615_v37 = vmul.f32 -0.5, %v3368_v53  ;;  %vm4082_vm2 = vcmp.lt.f32.partialorder %v2591_v6, 0.0004427343  ;;  %vm4086_vm3 = vcmp.lt.f32.partialorder %v2609_v60, 0.0004427343 }
 0x153   :  { %v3372_v11 = vpop.eup %3371  ;;  %3387 = vlog2.f32 %v2612_v62  ;;  %v2657_v23 = vadd.f32 1.0, %v3370_v2  ;;  %v2660_v43 = vmul.f32 -0.5, %v3370_v2  ;;  %v2598_v15 = vadd.f32 1.0, %v2597_v61 }
 0x154   :  { %v3374_v45 = vpop.eup %3373  ;;  %v2616_v17 = vadd.f32 1.0, %v2615_v37  ;;  %v2618_v22 = vand.u32 2147483647, %v3368_v53  ;;  %v2663_v36 = vand.u32 2147483647, %v3370_v2  ;;  %v2675_v39 = vadd.f32 1.0, %v3372_v11 }
 0x155   :  { %v4090_v26 = vpop.eup %3375  ;;  %3389 = vlog2.f32 %v2657_v23  ;;  %v2678_v30 = vmul.f32 -0.5, %v3372_v11  ;;  %v2590_v33 = vmul.f32 %v3362_v25, %v2589_v3  ;;  %v2608_v38 = vmul.f32 %v3364_v4, %v2607_v7 }
 0x156   :  { %vm4092_vm4 = vcmp.lt.f32.partialorder %v2600_v8, 0.0004427343  ;;  %v2666_v48 = vadd.f32 1.0, %v3374_v45  ;;  %v4096_v57 = vpop.eup %3377  ;;  %v2661_v27 = vadd.f32 1.0, %v2660_v43  ;;  %3391 = vlog2.f32 %v2675_v39 }
 0x157   :  { %v2681_v12 = vand.u32 2147483647, %v3372_v11  ;;  %v2669_v13 = vmul.f32 -0.5, %v3374_v45  ;;  %v4098_v34 = vpop.eup %3379  ;;  %v2599_v6 = vmul.f32 %v3366_v41, %v2598_v15  ;;  %vm4101_vm6 = vcmp.lt.f32.partialorder %v2618_v22, 0.0004427343 }
 0x158   :  { %3393 = vlog2.f32 %v2666_v48  ;;  %v2684_v25 = vadd.f32 1.0, %v4090_v26  ;;  %v2617_v60 = vmul.f32 %v3368_v53, %v2616_v17  ;;  %vm4106_vm7 = vcmp.lt.f32.partialorder %v2663_v36, 0.0004427343 }
 0x159   :  { %v2679_v62 = vadd.f32 1.0, %v2678_v30  ;;  %v2687_v3 = vmul.f32 -0.5, %v4090_v26  ;;  %v2672_v41 = vand.u32 2147483647, %v3374_v45  ;;  %v2729_v37 = vadd.f32 1.0, %v4096_v57 }
 0x15a   :  { %v3382_v4 = vpop.eup %3381  ;;  %3395 = vlog2.f32 %v2684_v25  ;;  %v2662_v53 = vmul.f32 %v3370_v2, %v2661_v27  ;;  %vm4114_vm10 = vcmp.lt.f32.partialorder %v2681_v12, 0.0004427343  ;;  %v2670_v17 = vadd.f32 1.0, %v2669_v13 }
 0x15b   :  { %v3384_v7 = vpop.eup %3383  ;;  %v2587_v8 = vmul.f32 0.6931472, %v3382_v4  ;;  %v2690_v22 = vand.u32 2147483647, %v4090_v26  ;;  %3397 = vlog2.f32 %v2729_v37  ;;  %v2732_v30 = vmul.f32 -0.5, %v4096_v57 }
 0x15c   :  { %v3386_v23 = vpop.eup %3385  ;;  %v2605_v43 = vmul.f32 0.6931472, %v3384_v7  ;;  %v2688_v2 = vadd.f32 1.0, %v2687_v3  ;;  %v2735_v27 = vand.u32 2147483647, %v4096_v57  ;;  %v2680_v12 = vmul.f32 %v3372_v11, %v2679_v62 }
 0x15d   :  { %v2593_v36 = vsel %vm4082_vm2, %v2590_v33, %v2587_v8  ;;  %v2596_v39 = vmul.f32 0.6931472, %v3386_v23  ;;  %v3388_v48 = vpop.eup %3387  ;;  %vm4130_vm14 = vcmp.lt.f32.partialorder %v2672_v41, 0.0004427343  ;;  %v2671_v7 = vmul.f32 %v3374_v45, %v2670_v17 }
 0x15e   :  { %v2801_v25 = vmul.f32 0.002, %v2593_v36  ;;  %v2611_v4 = vsel %vm4086_vm3, %v2608_v38, %v2605_v43  ;;  %v2614_v33 = vmul.f32 0.6931472, %v3388_v48  ;;  %vm4135_vm0 = vcmp.lt.f32.partialorder %v2690_v22, 0.0004427343 }
 0x15f   :  { %v2602_v20 = vsel %vm4092_vm4, %v2599_v6, %v2596_v39  ;;  %v3390_v52 = vpop.eup %3389  ;;  %v2803_v38 = vmul.f32 0.002, %v2611_v4  ;;  %v2747_v47 = vadd.f32 1.0, %v4098_v34  ;;  %v2733_v62 = vadd.f32 1.0, %v2732_v30 }
 0x160   :  { %v2802_v6 = vmul.f32 0.002, %v2602_v20  ;;  %v2620_v8 = vsel %vm4101_vm6, %v2617_v60, %v2614_v33  ;;  %v2659_v11 = vmul.f32 0.6931472, %v3390_v52  ;;  %v3392_v41 = vpop.eup %3391  ;;  %v2825_v37 = vsel %vm2489_vm5, %v3994_v18, %v2801_v25  ;;  %v4169_v25 = vpop.permute.xlu1 %2854 }
 0x161   :  { %v2689_v45 = vmul.f32 %v4090_v26, %v2688_v2  ;;  %vm4147_vm2 = vcmp.lt.f32.partialorder %v2735_v27, 0.0004427343  ;;  %3399 = vlog2.f32 %v2747_v47  ;;  %v2804_v17 = vmul.f32 0.002, %v2620_v8  ;;  %v4177_v2 = vpop.permute.xlu0 %2859 }
 0x162   :  { %v3394_v43 = vpop.eup %3393  ;;  %v2665_v59 = vsel %vm4106_vm7, %v2662_v53, %v2659_v11  ;;  %v2677_v60 = vmul.f32 0.6931472, %v3392_v41  ;;  %3401 = vpow2.f32 %v4077_v63  ;;  %v2827_v18 = vsel %vm2491_vm8, %v3997_v19, %v2803_v38 }
 0x163   :  { %v2809_v9 = vmul.f32 0.002, %v2665_v59  ;;  %v2668_v22 = vmul.f32 0.6931472, %v3394_v43  ;;  %vm2505_vm3 = vcmp.gt.f32.partialorder %v4060_v35, 20.0  ;;  %v2750_v26 = vmul.f32 -0.5, %v4098_v34 }
 0x164   :  { %v3396_v36 = vpop.eup %3395  ;;  %v2826_v39 = vsel %vm2490_vm9, %v4000_v54, %v2802_v6  ;;  %v2683_v61 = vsel %vm4114_vm10, %v2680_v12, %v2677_v60  ;;  %v2734_v63 = vmul.f32 %v4096_v57, %v2733_v62  ;;  %v2532_v53 = vmin.f32 %v4080_v0, 20.0 }
 0x165   :  { %v2811_v55 = vmul.f32 0.002, %v2683_v61  ;;  %v2674_v19 = vsel %vm4130_vm14, %v2671_v7, %v2668_v22  ;;  %v2686_v30 = vmul.f32 0.6931472, %v3396_v36  ;;  %v2753_v48 = vand.u32 2147483647, %v4098_v34  ;;  %v3398_v4 = vpop.eup %3397  ;;  %v4198_v7 = vpop.permute.xlu1 %2864 }
 0x166   :  { %v2828_v54 = vsel %vm2492_vm11, %v4003_v1, %v2804_v17  ;;  %v2833_v56 = vsel %vm2497_vm12, %v4026_v29, %v2809_v9  ;;  %v2810_v57 = vmul.f32 0.002, %v2674_v19  ;;  %v2575_v15 = vmul.f32 1.442695, %v2532_v53 }
 0x167   :  { %v2835_v27 = vsel %vm2499_vm13, %v4029_v10, %v2811_v55  ;;  %v2692_v20 = vsel %vm4135_vm0, %v2689_v45, %v2686_v30  ;;  %v2731_v33 = vmul.f32 0.6931472, %v3398_v4  ;;  %v2751_v12 = vadd.f32 1.0, %v2750_v26 }
 0x168   :  { %v2834_v1 = vsel %vm2498_vm15, %v4032_v14, %v2810_v57  ;;  %v2812_v58 = vmul.f32 0.002, %v2692_v20  ;;  %3403 = vpow2.f32 %v2575_v15  ;;  %v2867_v29 = vmul.f32 %v4169_v25, %v2825_v37 }
 0x169   :  { %v2737_v31 = vsel %vm4147_vm2, %v2734_v63, %v2731_v33  ;;  %v2868_v13 = vmul.f32 %v4169_v25, %v2826_v39  ;;  %v2875_v10 = vmul.f32 %v4177_v2, %v2833_v56  ;;  %v2876_v32 = vmul.f32 %v4177_v2, %v2834_v1  ;;  %v2972_v1 = vpop.permute.xlu0 %2971 }
 0x16a   :  { %v2836_v52 = vsel %vm2500_vm1, %v4035_v16, %v2812_v58  ;;  %v2817_v38 = vmul.f32 0.002, %v2737_v31  ;;  %v2869_v14 = vmul.f32 %v4169_v25, %v2827_v18  ;;  %v2877_v46 = vmul.f32 %v4177_v2, %v2835_v27 }
 0x16b   :  { %v3400_v3 = vpop.eup %3399  ;;  %v2752_v47 = vmul.f32 %v4098_v34, %v2751_v12  ;;  %v2878_v6 = vmul.f32 %v4177_v2, %v2836_v52  ;;  %v2891_v8 = vadd.f32 %v2875_v10, %v2867_v29  ;;  %v4202_v11 = vadd.f32 %v2876_v32, %v2868_v13 }
 0x16c   :  { %v3402_v62 = vpop.eup %3401  ;;  %v2841_v16 = vsel %vm2505_vm3, %v4044_v42, %v2817_v38  ;;  %v2749_v50 = vmul.f32 0.6931472, %v3400_v3  ;;  %v2870_v41 = vmul.f32 %v4169_v25, %v2828_v54  ;;  %v2910_v37 = vadd.f32 %v2877_v46, %v2869_v14 }
 0x16d   :  { %vm2754_vm4 = vcmp.lt.f32.partialorder %v2753_v48, 0.0004427343  ;;  %v2738_v45 = vadd.f32 1.0, %v3402_v62  ;;  %vm2892_vm5 = vcmask 1041408   ;;  %v2883_v23 = vmul.f32 %v4198_v7, %v2841_v16 }
 0x16e   :  { %v2755_v34 = vsel %vm2754_vm4, %v2752_v47, %v2749_v50  ;;  %v4209_v43 = vadd.f32 %v2878_v6, %v2870_v41  ;;  %vm2507_vm6 = vcmp.gt.f32.partialorder %v4063_v40, 20.0  ;;  %v2741_v18 = vmul.f32 -0.5, %v3402_v62 }
 0x16f   :  { %v2819_v17 = vmul.f32 0.002, %v2755_v34  ;;  %3405 = vlog2.f32 %v2738_v45  ;;  %v2893_v59 = vsel %vm2892_vm5, %v2883_v23, 0.0  ;;  %v4497_v61 = vlaneseq }
 0x170   :  { %v2894_v35 = vadd.f32 %v2893_v59, %v2891_v8  ;;  %v2742_v63 = vadd.f32 1.0, %v2741_v18  ;;  %v2744_v55 = vand.u32 2147483647, %v3402_v62  ;;  %vm2506_vm8 = vcmp.gt.f32.partialorder %v4071_v44, 20.0 }
 0x171   :  { %v2843_v42 = vsel %vm2507_vm6, %v4053_v51, %v2819_v17  ;;  %v4217_v51 = vshrl.u32 %v4497_v61, 7  ;;  %vm2508_vm10 = vcmp.gt.f32.partialorder %v4080_v0, 20.0 }
 0x172   :  { %v3404_v60 = vpop.eup %3403  ;;  %v2885_v9 = vmul.f32 %v4198_v7, %v2843_v42  ;;  %v2895_v26 = vrot.slane %v2894_v35, 4  ;;  %v2743_v4 = vmul.f32 %v3402_v62, %v2742_v63  ;;  %vm2745_vm7 = vcmp.lt.f32.partialorder %v2744_v55, 0.0004427343 }
 0x173   :  { %v2756_v22 = vadd.f32 1.0, %v3404_v60  ;;  %v2759_v40 = vmul.f32 -0.5, %v3404_v60  ;;  %4517 = vst [vmem:[#allocation9_spill] sm:$0xff] %v4217_v51  ;;  %v2762_v20 = vand.u32 2147483647, %v3404_v60  ;;  %v2976_v33 = vsub.s32 0, %v4217_v51 }
 0x174   :  { %v2911_v36 = vsel %vm2892_vm5, %v2885_v9, 0.0  ;;  %v2896_v39 = vadd.f32 %v2895_v26, %v2894_v35 }
 0x175   :  { %3407 = vlog2.f32 %v2756_v22  ;;  %v2912_v53 = vadd.f32 %v2911_v36, %v2910_v37  ;;  %v2760_v57 = vadd.f32 1.0, %v2759_v40  ;;  %vm2763_vm9 = vcmp.lt.f32.partialorder %v2762_v20, 0.0004427343 }
 0x176   :  { %v2897_v19 = vrot.slane %v2896_v39, 2  ;;  %v4223_v52 = vrot.slane %v2972_v1, %v2976_v33 }
 0x177   :  { %v2913_v54 = vrot.slane %v2912_v53, 4  ;;  %v2761_v13 = vmul.f32 %v3404_v60, %v2760_v57 }
 0x178   :  { %v2898_v15 = vadd.f32 %v2897_v19, %v2896_v39 }
 0x179   :  { %v3406_v30 = vpop.eup %3405  ;;  %v2914_v12 = vadd.f32 %v2913_v54, %v2912_v53 }
 0x17a   :  { %v2740_v48 = vmul.f32 0.6931472, %v3406_v30  ;;  %v2899_v32 = vrot.slane %v2898_v15, 1 }
 0x17b   :  { %v2915_v47 = vrot.slane %v2914_v12, 2 }
 0x17c   :  { %v2746_v56 = vsel %vm2745_vm7, %v2743_v4, %v2740_v48  ;;  %v2900_v41 = vadd.f32 %v2899_v32, %v2898_v15 }
 0x17d   :  { %v2818_v27 = vmul.f32 0.002, %v2746_v56  ;;  %v2916_v9 = vadd.f32 %v2915_v47, %v2914_v12 }
 0x17e   :  { %v2978_v39 = vadd.f32 %v4223_v52, %v2900_v41 }
 0x17f   :  { %v3408_v58 = vpop.eup %3407  ;;  %v2842_v29 = vsel %vm2506_vm8, %v4066_v24, %v2818_v27  ;;  %v2917_v15 = vrot.slane %v2916_v9, 1 }
 0x180   :  { %v2758_v31 = vmul.f32 0.6931472, %v3408_v58  ;;  %v2884_v10 = vmul.f32 %v4198_v7, %v2842_v29 }
 0x182   :  { %v1857_v38 = vpop.f32.mrb[6].mxu0  ;;  %v2446_v14 = vpop.f32.mrb[6].mxu1  ;;  %v2764_v46 = vsel %vm2763_vm9, %v2761_v13, %v2758_v31  ;;  %v2902_v3 = vsel %vm2892_vm5, %v2884_v10, 0.0  ;;  %v2918_v10 = vadd.f32 %v2917_v15, %v2916_v9 }
 0x183   :  { %v4227_v44 = vadd.f32 %v1857_v38, %v3991_v49  ;;  %v1859_v6 = vpop.f32.mrb[7].mxu0  ;;  %v2448_v8 = vpop.f32.mrb[7].mxu1  ;;  %v2820_v24 = vmul.f32 0.002, %v2764_v46  ;;  %v2903_v62 = vadd.f32 %v2902_v3, %v4202_v11  ;;  %v4231_v16 = vadd.f32 %v2446_v14, %v3991_v49 }
 0x184   :  { %v4234_v50 = vadd.f32 %v1859_v6, %v3991_v49  ;;  %v4241_v45 = vadd.f32 %v2448_v8, %v3991_v49  ;;  %v2986_v8 = vsub.f32 0.0, %v2978_v39 }
 0x185   :  { %v4238_v37 = vmul.f32 500.0, %v4227_v44  ;;  %v2844_v23 = vsel %vm2508_vm10, %v4075_v28, %v2820_v24  ;;  %v2904_v34 = vrot.slane %v2903_v62, 4  ;;  %v4245_v11 = vmul.f32 500.0, %v4231_v16 }
 0x186   :  { %v4248_v17 = vmul.f32 500.0, %v4234_v50  ;;  %v1864_v59 = vpop.f32.mrb[8].mxu0  ;;  %v2453_v42 = vpop.f32.mrb[8].mxu1  ;;  %v2886_v0 = vmul.f32 %v4198_v7, %v2844_v23  ;;  %v4253_v60 = vmul.f32 500.0, %v4241_v45 }
 0x187   :  { %v2517_v35 = vmin.f32 %v4238_v37, 20.0  ;;  %v1866_v49 = vpop.f32.mrb[9].mxu0  ;;  %v2455_v18 = vpop.f32.mrb[9].mxu1  ;;  %v2519_v28 = vmin.f32 %v4245_v11, 20.0  ;;  %v2905_v63 = vadd.f32 %v2904_v34, %v2903_v62  ;;  %v4262_v4 = vadd.f32 %v1864_v59, %v4011_v21 }
 0x188   :  { %v2920_v22 = vsel %vm2892_vm5, %v2886_v0, 0.0  ;;  %v2518_v36 = vmin.f32 %v4248_v17, 20.0  ;;  %v2520_v40 = vmin.f32 %v4253_v60, 20.0  ;;  %v4265_v54 = vadd.f32 %v2453_v42, %v4011_v21 }
 0x189   :  { %v2545_v26 = vmul.f32 1.442695, %v2517_v35  ;;  %v2921_v53 = vadd.f32 %v2920_v22, %v4209_v43  ;;  %v2549_v55 = vmul.f32 1.442695, %v2519_v28  ;;  %v4270_v20 = vmul.f32 500.0, %v4262_v4 }
 0x18a   :  { %v1871_v19 = vpop.f32.mrb[10].mxu0  ;;  %v2460_v30 = vpop.f32.mrb[10].mxu1  ;;  %v2547_v48 = vmul.f32 1.442695, %v2518_v36  ;;  %v2551_v43 = vmul.f32 1.442695, %v2520_v40  ;;  %v4276_v12 = vadd.f32 %v1866_v49, %v4011_v21  ;;  %v4279_v29 = vadd.f32 %v2455_v18, %v4011_v21 }
 0x18b   :  { %3409 = vpow2.f32 %v2545_v26  ;;  %v1873_v56 = vpop.f32.mrb[11].mxu0  ;;  %v4267_v57 = vpop.f32.mrb[11].mxu1  ;;  %v2922_v27 = vrot.slane %v2921_v53, 4  ;;  %v4273_v33 = vmul.f32 500.0, %v4265_v54  ;;  %v2906_v1 = vrot.slane %v2905_v63, 2 }
 0x18c   :  { %3411 = vpow2.f32 %v2549_v55  ;;  %v2525_v31 = vmin.f32 %v4270_v20, 20.0  ;;  %v4284_v32 = vmul.f32 500.0, %v4276_v12  ;;  %v4287_v46 = vmul.f32 500.0, %v4279_v29 }
 0x18d   :  { %3413 = vpow2.f32 %v2547_v48  ;;  %v2923_v58 = vadd.f32 %v2922_v27, %v2921_v53  ;;  %v2527_v13 = vmin.f32 %v4273_v33, 20.0  ;;  %v4290_v3 = vadd.f32 %v1871_v19, %v4023_v5 }
 0x18e   :  { %3415 = vpow2.f32 %v2551_v43  ;;  %v2561_v38 = vmul.f32 1.442695, %v2525_v31  ;;  %v2907_v47 = vadd.f32 %v2906_v1, %v2905_v63  ;;  %v2526_v21 = vmin.f32 %v4284_v32, 20.0 }
 0x18f   :  { %v2565_v14 = vmul.f32 1.442695, %v2527_v13  ;;  %v2924_v6 = vrot.slane %v2923_v58, 2  ;;  %v4294_v24 = vadd.f32 %v2460_v30, %v4023_v5  ;;  %v4297_v41 = vmul.f32 500.0, %v4290_v3 }
 0x190   :  { %3417 = vpow2.f32 %v2561_v38  ;;  %v2563_v62 = vmul.f32 1.442695, %v2526_v21  ;;  %v2528_v34 = vmin.f32 %v4287_v46, 20.0  ;;  %v4301_v59 = vadd.f32 %v4223_v52, %v2918_v10 }
 0x191   :  { %3419 = vpow2.f32 %v2565_v14  ;;  %v2908_v0 = vrot.slane %v2907_v47, 1  ;;  %v2925_v35 = vadd.f32 %v2924_v6, %v2923_v58  ;;  %v4303_v18 = vmul.f32 1.442695, %v2986_v8 }
 0x192   :  { %3421 = vpow2.f32 %v2563_v62  ;;  %v4306_v26 = vmul.f32 500.0, %v4294_v24  ;;  %v2533_v53 = vmin.f32 %v4297_v41, 20.0  ;;  %v2567_v19 = vmul.f32 1.442695, %v2528_v34 }
 0x193   :  { %v2926_v30 = vrot.slane %v2925_v35, 1  ;;  %v4309_v27 = vadd.f32 %v2908_v0, %v2907_v47  ;;  %v4312_v58 = vadd.f32 %v1873_v56, %v4023_v5  ;;  %vm2493_vm13 = vcmp.gt.f32.partialorder %v4238_v37, 20.0 }
 0x194   :  { %v2577_v13 = vmul.f32 1.442695, %v2533_v53  ;;  %v2535_v10 = vmin.f32 %v4306_v26, 20.0  ;;  %vm2495_vm14 = vcmp.gt.f32.partialorder %v4245_v11, 20.0  ;;  %vm2494_vm0 = vcmp.gt.f32.partialorder %v4248_v17, 20.0 }
 0x195   :  { %v3410_v23 = vpop.eup %3409  ;;  %v4319_v8 = vadd.f32 %v2926_v30, %v2925_v35  ;;  %vm2496_vm2 = vcmp.gt.f32.partialorder %v4253_v60, 20.0  ;;  %vm2501_vm4 = vcmp.gt.f32.partialorder %v4270_v20, 20.0  ;;  %vm2503_vm7 = vcmp.gt.f32.partialorder %v4273_v33, 20.0 }
 0x196   :  { %v3412_v42 = vpop.eup %3411  ;;  %v2621_v49 = vadd.f32 1.0, %v3410_v23  ;;  %v2624_v28 = vmul.f32 -0.5, %v3410_v23  ;;  %v2627_v39 = vand.u32 2147483647, %v3410_v23  ;;  %vm2502_vm9 = vcmp.gt.f32.partialorder %v4284_v32, 20.0 }
 0x197   :  { %v3414_v9 = vpop.eup %3413  ;;  %v2639_v22 = vadd.f32 1.0, %v3412_v42  ;;  %v2642_v55 = vmul.f32 -0.5, %v3412_v42  ;;  %v2645_v48 = vand.u32 2147483647, %v3412_v42 }
 0x198   :  { %v3416_v36 = vpop.eup %3415  ;;  %3423 = vlog2.f32 %v2621_v49  ;;  %v2630_v63 = vadd.f32 1.0, %v3414_v9  ;;  %v2633_v40 = vmul.f32 -0.5, %v3414_v9  ;;  %v2625_v43 = vadd.f32 1.0, %v2624_v28 }
 0x199   :  { %3425 = vlog2.f32 %v2639_v22  ;;  %v2648_v15 = vadd.f32 1.0, %v3416_v36  ;;  %v2651_v1 = vmul.f32 -0.5, %v3416_v36  ;;  %vm4314_vm11 = vcmp.lt.f32.partialorder %v2627_v39, 0.0004427343 }
 0x19a   :  { %3427 = vlog2.f32 %v2630_v63  ;;  %v3418_v38 = vpop.eup %3417  ;;  %v2643_v14 = vadd.f32 1.0, %v2642_v55  ;;  %v2634_v6 = vadd.f32 1.0, %v2633_v40  ;;  %v2636_v21 = vand.u32 2147483647, %v3414_v9 }
 0x19b   :  { %3429 = vlog2.f32 %v2648_v15  ;;  %v3420_v47 = vpop.eup %3419  ;;  %vm4321_vm12 = vcmp.lt.f32.partialorder %v2645_v48, 0.0004427343  ;;  %v2654_v56 = vand.u32 2147483647, %v3416_v36  ;;  %v2693_v34 = vadd.f32 1.0, %v3418_v38 }
 0x19c   :  { %3431 = vpow2.f32 %v2567_v19  ;;  %v2626_v0 = vmul.f32 %v3410_v23, %v2625_v43  ;;  %v2652_v49 = vadd.f32 1.0, %v2651_v1  ;;  %v2711_v28 = vadd.f32 1.0, %v3420_v47  ;;  %v3422_v53 = vpop.eup %3421 }
 0x19d   :  { %3433 = vpow2.f32 %v2577_v13  ;;  %v2696_v22 = vmul.f32 -0.5, %v3418_v38  ;;  %v2714_v39 = vmul.f32 -0.5, %v3420_v47  ;;  %v2581_v63 = vmul.f32 1.442695, %v2535_v10 }
 0x19e   :  { %3435 = vlog2.f32 %v2693_v34  ;;  %v2644_v35 = vmul.f32 %v3412_v42, %v2643_v14  ;;  %v2635_v55 = vmul.f32 %v3414_v9, %v2634_v6  ;;  %vm4327_vm15 = vcmp.lt.f32.partialorder %v2636_v21, 0.0004427343 }
 0x19f   :  { %3437 = vlog2.f32 %v2711_v28  ;;  %vm4332_vm1 = vcmp.lt.f32.partialorder %v2654_v56, 0.0004427343  ;;  %v2699_v30 = vand.u32 2147483647, %v3418_v38  ;;  %v2702_v48 = vadd.f32 1.0, %v3422_v53 }
 0x1a0   :  { %v2705_v15 = vmul.f32 -0.5, %v3422_v53  ;;  %v2653_v13 = vmul.f32 %v3416_v36, %v2652_v49  ;;  %v2717_v42 = vand.u32 2147483647, %v3420_v47  ;;  %3439 = vpow2.f32 %v2581_v63 }
 0x1a1   :  { %v2697_v14 = vadd.f32 1.0, %v2696_v22  ;;  %v2715_v6 = vadd.f32 1.0, %v2714_v39  ;;  %3441 = vlog2.f32 %v2702_v48  ;;  %v2708_v34 = vand.u32 2147483647, %v3422_v53 }
 0x1a2   :  { %v3424_v23 = vpop.eup %3423  ;;  %v4339_v28 = vmul.f32 500.0, %v4312_v58  ;;  %vm4344_vm3 = vcmp.lt.f32.partialorder %v2699_v30, 0.0004427343  ;;  %v2706_v22 = vadd.f32 1.0, %v2705_v15  ;;  %vm4353_vm6 = vcmp.lt.f32.partialorder %v2717_v42, 0.0004427343 }
 0x1a3   :  { %v3426_v43 = vpop.eup %3425  ;;  %v2623_v1 = vmul.f32 0.6931472, %v3424_v23  ;;  %v2716_v30 = vmul.f32 %v3420_v47, %v2715_v6  ;;  %vm4363_vm8 = vcmp.lt.f32.partialorder %v2708_v34, 0.0004427343 }
 0x1a4   :  { %v3428_v9 = vpop.eup %3427  ;;  %v2641_v10 = vmul.f32 0.6931472, %v3426_v43  ;;  %v4370_v43 = vadd.f32 %v4267_v57, %v4023_v5  ;;  %v2979_v5 = vadd.f32 %v4223_v52, %v4309_v27 }
 0x1a5   :  { %v2629_v21 = vsel %vm4314_vm11, %v2626_v0, %v2623_v1  ;;  %v2632_v56 = vmul.f32 0.6931472, %v3428_v9  ;;  %v3430_v61 = vpop.eup %3429  ;;  %v2707_v1 = vmul.f32 %v3422_v53, %v2706_v22  ;;  %vm2504_vm11 = vcmp.gt.f32.partialorder %v4287_v46, 20.0 }
 0x1a6   :  { %v2805_v51 = vmul.f32 0.002, %v2629_v21  ;;  %v2647_v36 = vsel %vm4321_vm12, %v2644_v35, %v2641_v10  ;;  %v4348_v39 = vpop.eup %3431  ;;  %v2650_v63 = vmul.f32 0.6931472, %v3430_v61  ;;  %v2698_v35 = vmul.f32 %v3418_v38, %v2697_v14 }
 0x1a7   :  { %v2807_v31 = vmul.f32 0.002, %v2647_v36  ;;  %v2638_v0 = vsel %vm4327_vm15, %v2635_v55, %v2632_v56  ;;  %v2720_v48 = vadd.f32 1.0, %v4348_v39  ;;  %v4359_v15 = vpop.eup %3433  ;;  %v2534_v55 = vmin.f32 %v4339_v28, 20.0 }
 0x1a8   :  { %v2806_v62 = vmul.f32 0.002, %v2638_v0  ;;  %v2656_v40 = vsel %vm4332_vm1, %v2653_v13, %v2650_v63  ;;  %v3436_v38 = vpop.eup %3435  ;;  %v2829_v47 = vsel %vm2493_vm13, %v4227_v44, %v2805_v51  ;;  %v2723_v51 = vmul.f32 -0.5, %v4348_v39 }
 0x1a9   :  { %v2831_v19 = vsel %vm2495_vm14, %v4231_v16, %v2807_v31  ;;  %3443 = vlog2.f32 %v2720_v48  ;;  %v3438_v13 = vpop.eup %3437  ;;  %v2808_v9 = vmul.f32 0.002, %v2656_v40  ;;  %v2695_v10 = vmul.f32 0.6931472, %v3436_v38 }
 0x1aa   :  { %v2830_v42 = vsel %vm2494_vm0, %v4234_v50, %v2806_v62  ;;  %v2713_v37 = vmul.f32 0.6931472, %v3438_v13  ;;  %v2726_v44 = vand.u32 2147483647, %v4348_v39  ;;  %v2765_v16 = vadd.f32 1.0, %v4359_v15  ;;  %v4387_v11 = vpop.eup %3439 }
 0x1ab   :  { %v2871_v57 = vmul.f32 %v4169_v25, %v2829_v47  ;;  %v2873_v50 = vmul.f32 %v4169_v25, %v2831_v19  ;;  %v2701_v17 = vsel %vm4344_vm3, %v2698_v35, %v2695_v10  ;;  %v2579_v53 = vmul.f32 1.442695, %v2534_v55  ;;  %v3442_v14 = vpop.eup %3441 }
 0x1ac   :  { %v2872_v27 = vmul.f32 %v4169_v25, %v2830_v42  ;;  %v2813_v6 = vmul.f32 0.002, %v2701_v17  ;;  %v2719_v21 = vsel %vm4353_vm6, %v2716_v30, %v2713_v37  ;;  %3445 = vlog2.f32 %v2765_v16 }
 0x1ad   :  { %v2832_v56 = vsel %vm2496_vm2, %v4241_v45, %v2808_v9  ;;  %v2815_v34 = vmul.f32 0.002, %v2719_v21  ;;  %v2704_v36 = vmul.f32 0.6931472, %v3442_v14  ;;  %v2783_v22 = vadd.f32 1.0, %v4387_v11 }
 0x1ae   :  { %v2837_v49 = vsel %vm2501_vm4, %v4262_v4, %v2813_v6  ;;  %v2724_v31 = vadd.f32 1.0, %v2723_v51  ;;  %vm4403_vm10 = vcmp.lt.f32.partialorder %v2726_v44, 0.0004427343  ;;  %v2768_v63 = vmul.f32 -0.5, %v4359_v15 }
 0x1af   :  { %v2879_v23 = vmul.f32 %v4177_v2, %v2837_v49  ;;  %v2839_v45 = vsel %vm2503_vm7, %v4265_v54, %v2815_v34  ;;  %v2710_v60 = vsel %vm4363_vm8, %v2707_v1, %v2704_v36  ;;  %3447 = vlog2.f32 %v2783_v22 }
 0x1b0   :  { %v2874_v4 = vmul.f32 %v4169_v25, %v2832_v56  ;;  %v2881_v20 = vmul.f32 %v4177_v2, %v2839_v45  ;;  %v2814_v62 = vmul.f32 0.002, %v2710_v60  ;;  %v2786_v35 = vmul.f32 -0.5, %v4387_v11 }
 0x1b1   :  { %v2928_v30 = vadd.f32 %v2879_v23, %v2871_v57  ;;  %3449 = vpow2.f32 %v2579_v53  ;;  %v4419_v48 = vmul.f32 500.0, %v4370_v43  ;;  %v2981_v54 = vadd.f32 %v4223_v52, %v4319_v8 }
 0x1b2   :  { %v4423_v40 = vadd.f32 %v2881_v20, %v2873_v50  ;;  %v2838_v25 = vsel %vm2502_vm9, %v4276_v12, %v2814_v62  ;;  %v2725_v61 = vmul.f32 %v4348_v39, %v2724_v31  ;;  %v2769_v55 = vadd.f32 1.0, %v2768_v63 }
 0x1b3   :  { %v3444_v33 = vpop.eup %3443  ;;  %v2880_v38 = vmul.f32 %v4177_v2, %v2838_v25  ;;  %v2771_v19 = vand.u32 2147483647, %v4359_v15  ;;  %v2536_v1 = vmin.f32 %v4419_v48, 20.0  ;;  %v2987_v13 = vsub.f32 0.0, %v2979_v5 }
 0x1b4   :  { %v2722_v47 = vmul.f32 0.6931472, %v3444_v33  ;;  %v2988_v8 = vsub.f32 0.0, %v4301_v59  ;;  %v2989_v42 = vsub.f32 0.0, %v2981_v54  ;;  %3451 = vpow2.f32 %v4303_v18 }
 0x1b5   :  { %v4434_v9 = vadd.f32 %v2880_v38, %v2872_v27  ;;  %v2787_v32 = vadd.f32 1.0, %v2786_v35  ;;  %v2583_v39 = vmul.f32 1.442695, %v2536_v1  ;;  %v2770_v51 = vmul.f32 %v4359_v15, %v2769_v55 }
 0x1b6   :  { %v2728_v12 = vsel %vm4403_vm10, %v2725_v61, %v2722_v47  ;;  %v3446_v10 = vpop.eup %3445  ;;  %v2996_v44 = vmul.f32 1.442695, %v2987_v13  ;;  %v2998_v16 = vmul.f32 1.442695, %v2988_v8  ;;  %v2789_v5 = vand.u32 2147483647, %v4387_v11 }
 0x1b7   :  { %v2816_v37 = vmul.f32 0.002, %v2728_v12  ;;  %v2767_v57 = vmul.f32 0.6931472, %v3446_v10  ;;  %3453 = vpow2.f32 %v2583_v39  ;;  %v3000_v59 = vmul.f32 1.442695, %v2989_v42 }
 0x1b8   :  { %vm2955_vm12 = vcmask 850944   ;;  %vm2772_vm13 = vcmp.lt.f32.partialorder %v2771_v19, 0.0004427343  ;;  %3455 = vpow2.f32 %v2996_v44  ;;  %v2788_v27 = vmul.f32 %v4387_v11, %v2787_v32 }
 0x1b9   :  { %v2840_v18 = vsel %vm2504_vm11, %v4279_v29, %v2816_v37  ;;  %v3448_v50 = vpop.eup %3447  ;;  %v2773_v53 = vsel %vm2772_vm13, %v2770_v51, %v2767_v57  ;;  %3457 = vpow2.f32 %v2998_v16  ;;  %v2956_v21 = vsel %vm2955_vm12, %v2874_v4, 0.0 }
 0x1ba   :  { %v2882_v17 = vmul.f32 %v4177_v2, %v2840_v18  ;;  %v2821_v15 = vmul.f32 0.002, %v2773_v53  ;;  %v2785_v14 = vmul.f32 0.6931472, %v3448_v50  ;;  %3459 = vpow2.f32 %v3000_v59 }
 0x1bb   :  { %v3450_v6 = vpop.eup %3449  ;;  %vm2509_vm14 = vcmp.gt.f32.partialorder %v4297_v41, 20.0  ;;  %vm2790_vm15 = vcmp.lt.f32.partialorder %v2789_v5, 0.0004427343  ;;  %vm2511_vm0 = vcmp.gt.f32.partialorder %v4306_v26, 20.0  ;;  %v3542_v47 = vmov 1966171168  }
 0x1bc   :  { %v2957_v56 = vsel %vm2955_vm12, %v2882_v17, 0.0  ;;  %v2845_v29 = vsel %vm2509_vm14, %v4290_v3, %v2821_v15  ;;  %v2791_v34 = vsel %vm2790_vm15, %v2788_v27, %v2785_v14  ;;  %v2774_v36 = vadd.f32 1.0, %v3450_v6  ;;  %v4534_v17 = vld [vmem:[#allocation9_spill] sm:$0xff] }
 0x1bd   :  { %v4446_v46 = vadd.f32 %v2957_v56, %v2956_v21  ;;  %v2887_v2 = vmul.f32 %v4198_v7, %v2845_v29  ;;  %v2823_v22 = vmul.f32 0.002, %v2791_v34  ;;  %v2777_v45 = vmul.f32 -0.5, %v3450_v6 }
 0x1be   :  { %v3452_v49 = vpop.eup %3451  ;;  %3461 = vlog2.f32 %v2774_v36  ;;  %v2780_v38 = vand.u32 2147483647, %v3450_v6  ;;  %v3047_v19 = vunpack.c.l.s4 %v3542_v47  ;;  %vm2510_vm2 = vcmp.gt.f32.partialorder %v4339_v28, 20.0 }
 0x1bf   :  { %v2929_v11 = vsel %vm2892_vm5, %v2887_v2, 0.0  ;;  %v2847_v31 = vsel %vm2511_vm0, %v4294_v24, %v2823_v22  ;;  %v3010_v63 = vadd.f32 1.0, %v3452_v49  ;;  %v2778_v25 = vadd.f32 1.0, %v2777_v45 }
 0x1c0   :  { %v2930_v0 = vadd.f32 %v2929_v11, %v2928_v30  ;;  %v2889_v41 = vmul.f32 %v4198_v7, %v2847_v31  ;;  %vm2781_vm1 = vcmp.lt.f32.partialorder %v2780_v38, 0.0004427343  ;;  %v3048_v39 = vunpack.c.0.s8 %v3047_v19 }
 0x1c1   :  { %v3454_v23 = vpop.eup %3453  ;;  %3463 = vrcp.f32 %v3010_v63  ;;  %v2779_v32 = vmul.f32 %v3450_v6, %v2778_v25  ;;  %vm2512_vm4 = vcmp.gt.f32.partialorder %v4419_v48, 20.0  ;;  %vm2959_vm6 = vcmask 844800  }
 0x1c2   :  { %v3456_v3 = vpop.eup %3455  ;;  %v2931_v60 = vrot.slane %v2930_v0, 4  ;;  %v2947_v4 = vsel %vm2892_vm5, %v2889_v41, 0.0  ;;  %v2792_v20 = vadd.f32 1.0, %v3454_v23  ;;  %v2795_v13 = vmul.f32 -0.5, %v3454_v23 }
 0x1c3   :  { %v3458_v62 = vpop.eup %3457  ;;  %v2948_v35 = vadd.f32 %v2947_v4, %v4423_v40  ;;  %v3011_v26 = vadd.f32 1.0, %v3456_v3  ;;  %v2798_v16 = vand.u32 2147483647, %v3454_v23  ;;  %v4459_v53 = vsub.s32 %v3048_v39, %v4534_v17 }
 0x1c4   :  { %v3460_v54 = vpop.eup %3459  ;;  %v2932_v33 = vadd.f32 %v2931_v60, %v2930_v0  ;;  %3465 = vlog2.f32 %v2792_v20  ;;  %v3012_v24 = vadd.f32 1.0, %v3458_v62  ;;  %v2796_v37 = vadd.f32 1.0, %v2795_v13 }
 0x1c5   :  { %v2949_v30 = vrot.slane %v2948_v35, 4  ;;  %v3013_v61 = vadd.f32 1.0, %v3460_v54  ;;  %3467 = vrcp.f32 %v3011_v26  ;;  %vm2799_vm3 = vcmp.lt.f32.partialorder %v2798_v16, 0.0004427343 }
 0x1c6   :  { %v2933_v55 = vrot.slane %v2932_v33, 2  ;;  %3469 = vrcp.f32 %v3012_v24  ;;  %v2797_v27 = vmul.f32 %v3454_v23, %v2796_v37 }
 0x1c7   :  { %v2950_v1 = vadd.f32 %v2949_v30, %v2948_v35  ;;  %3471 = vrcp.f32 %v3013_v61 }
 0x1c8   :  { %v3462_v8 = vpop.eup %3461  ;;  %v2934_v40 = vadd.f32 %v2933_v55, %v2932_v33 }
 0x1c9   :  { %v2951_v42 = vrot.slane %v2950_v1, 2  ;;  %v2776_v12 = vmul.f32 0.6931472, %v3462_v8 }
 0x1ca   :  { %v2935_v51 = vrot.slane %v2934_v40, 1 }
 0x1cb   :  { %v2782_v10 = vsel %vm2781_vm1, %v2779_v32, %v2776_v12  ;;  %v3464_v57 = vpop.eup %3463  ;;  %v2952_v5 = vadd.f32 %v2951_v42, %v2950_v1 }
 0x1cc   :  { %v2822_v44 = vmul.f32 0.002, %v2782_v10  ;;  %v2936_v21 = vadd.f32 %v2935_v51, %v2934_v40 }
 0x1cd   :  { %v2953_v34 = vrot.slane %v2952_v5, 1 }
 0x1ce   :  { %v3466_v59 = vpop.eup %3465  ;;  %v2846_v18 = vsel %vm2510_vm2, %v4312_v58, %v2822_v44  ;;  %v2982_v11 = vadd.f32 %v4223_v52, %v2936_v21 }
 0x1cf   :  { %v3468_v50 = vpop.eup %3467  ;;  %v2888_v15 = vmul.f32 %v4198_v7, %v2846_v18  ;;  %v2794_v14 = vmul.f32 0.6931472, %v3466_v59  ;;  %v2954_v63 = vadd.f32 %v2953_v34, %v2952_v5 }
 0x1d0   :  { %v3470_v6 = vpop.eup %3469  ;;  %v3042_v56 = vcombine.low %v3464_v57, %v3468_v50  ;;  %v2990_v60 = vsub.f32 0.0, %v2982_v11 }
 0x1d1   :  { %v3472_v29 = vpop.eup %3471  ;;  %v2938_v36 = vsel %vm2892_vm5, %v2888_v15, 0.0  ;;  %v2800_v28 = vsel %vm2799_vm3, %v2797_v27, %v2794_v14  ;;  %v2984_v20 = vadd.f32 %v4223_v52, %v2954_v63  ;;  %v4535_v14 = vlaneseq }
 0x1d2   :  { %v2939_v2 = vadd.f32 %v2938_v36, %v4434_v9  ;;  %v2824_v58 = vmul.f32 0.002, %v2800_v28  ;;  %v3043_v22 = vcombine.low %v3470_v6, %v3472_v29  ;;  %v3052_v49 = vrot.slane %v3042_v56, %v4459_v53 }
 0x1d3   :  { %v3002_v26 = vmul.f32 1.442695, %v2990_v60  ;;  %vm3094_vm5 = vcmp.lt.s32.totalorder %v4535_v14, 1000 }
 0x1d4   :  { %v2940_v31 = vrot.slane %v2939_v2, 4  ;;  %v2848_v0 = vsel %vm2512_vm4, %v4370_v43, %v2824_v58  ;;  %v3059_v41 = vrot.slane %v3043_v22, %v4459_v53  ;;  %v2992_v43 = vsub.f32 0.0, %v2984_v20 }
 0x1d5   :  { %v2890_v23 = vmul.f32 %v4198_v7, %v2848_v0  ;;  %3473 = vpow2.f32 %v3002_v26 }
 0x1d6   :  { %v2941_v45 = vadd.f32 %v2940_v31, %v2939_v2  ;;  %v3074_v3 = vcombine.low %v3052_v49, %v3059_v41  ;;  %v3006_v61 = vmul.f32 1.442695, %v2992_v43 }
 0x1d7   :  { %v2960_v9 = vsel %vm2959_vm6, %v2890_v23, 0.0 }
 0x1d8   :  { %v2942_v4 = vrot.slane %v2941_v45, 2  ;;  %v2961_v48 = vadd.f32 %v2960_v9, %v4446_v46  ;;  %3475 = vpow2.f32 %v3006_v61  ;;  %v3082_v17 = vrot.slane %v3074_v3, %v4459_v53 }
 0x1da   :  { %v2943_v62 = vadd.f32 %v2942_v4, %v2941_v45  ;;  %v2962_v35 = vrot.slane %v2961_v48, 4 }
 0x1dc   :  { %v2944_v54 = vrot.slane %v2943_v62, 1  ;;  %v2963_v33 = vadd.f32 %v2962_v35, %v2961_v48 }
 0x1de   :  { %v2945_v24 = vadd.f32 %v2944_v54, %v2943_v62  ;;  %v2964_v30 = vrot.slane %v2963_v33, 2 }
 0x1df   :  { %v3474_v13 = vpop.eup %3473 }
 0x1e0   :  { %v2983_v7 = vadd.f32 %v4223_v52, %v2945_v24  ;;  %v2965_v25 = vadd.f32 %v2964_v30, %v2963_v33  ;;  %v3014_v40 = vadd.f32 1.0, %v3474_v13 }
 0x1e2   :  { %v2991_v55 = vsub.f32 0.0, %v2983_v7  ;;  %v2966_v38 = vrot.slane %v2965_v25, 1  ;;  %v3476_v42 = vpop.eup %3475 }
 0x1e3   :  { %v3016_v39 = vadd.f32 1.0, %v3476_v42 }
 0x1e4   :  { %v3004_v47 = vmul.f32 1.442695, %v2991_v55  ;;  %v2967_v19 = vadd.f32 %v2966_v38, %v2965_v25 }
 0x1e6   :  { %3477 = vpow2.f32 %v3004_v47  ;;  %v2985_v46 = vadd.f32 %v4223_v52, %v2967_v19 }
 0x1e8   :  { %v2993_v1 = vsub.f32 0.0, %v2985_v46 }
 0x1ea   :  { %v3008_v8 = vmul.f32 1.442695, %v2993_v1 }
 0x1ec   :  { %3479 = vpow2.f32 %v3008_v8 }
 0x1ed   :  { %3481 = vrcp.f32 %v3014_v40 }
 0x1f0   :  { %v3478_v12 = vpop.eup %3477 }
 0x1f1   :  { %v3015_v32 = vadd.f32 1.0, %v3478_v12 }
 0x1f3   :  { %3483 = vrcp.f32 %v3015_v32 }
 0x1f4   :  { %3485 = vrcp.f32 %v3016_v39 }
 0x1f6   :  { %v3480_v10 = vpop.eup %3479 }
 0x1f7   :  { %v3017_v37 = vadd.f32 1.0, %v3480_v10  ;;  %v3482_v51 = vpop.eup %3481 }
 0x1f9   :  { %3487 = vrcp.f32 %v3017_v37 }
 0x1fd   :  { %v3484_v44 = vpop.eup %3483 }
 0x1fe   :  { %v3044_v16 = vcombine.low %v3482_v51, %v3484_v44  ;;  %v3486_v57 = vpop.eup %3485 }
 0x200   :  { %v3066_v59 = vrot.slane %v3044_v16, %v4459_v53 }
 0x203   :  { %v3488_v52 = vpop.eup %3487 }
 0x204   :  { %v3045_v5 = vcombine.low %v3486_v57, %v3488_v52 }
 0x206   :  { %v3073_v18 = vrot.slane %v3045_v5, %v4459_v53 }
 0x208   :  { %v3075_v50 = vcombine.low %v3066_v59, %v3073_v18 }
 0x20a   :  { %v3089_v15 = vrot.slane %v3075_v50, %v4459_v53 }
 0x20c   :  { %v3090_v27 = vcombine.low %v3082_v17, %v3089_v15 }
 0x20e   :  { %3096 = vst.msk [vmem:[#allocation6] sm:$0xff] %vm3094_vm5, %v3090_v27 }
 0x20f   :  { %3522 = shalt.err (!%p3519_p12)
}
 0x210   :  { %s3523_s27 = scalar_lea.hbm %s4496_s5, 128 }
 0x211   :  { %p3524_p13 = scmp.ne.s32.totalorder %s4496_s5, %s3523_s27  ;;  %p3527_p0 = scmp.lt.u32.totalorder %s3523_s27, %s4496_s5 }
 0x213   :  { %p3529_p1 = pnand %p3527_p0, %p3524_p13 }
 0x215   :  { %3532 = shalt.err (!%p3529_p1)
}
 0x216   :  { %3106 = dma.vmem_to_hbm [thread:$0]  %s3104_s23, 128, %s4496_s5, [#allocation5]  }
 0x217   :  { %3535 = dma.done.wait [#allocation5], 128  }
 0x218   :  { %3536 = vsyncadd [#allocation5], 4294967168 }
 0x219   :  { %3110 = vsyncpa [#allocation4], 1 }
 0x21a   :  { %3111 = vsyncpa [#allocation5], 1 }

</bundles_post_ra>
